<compile_context>
chip_gen: v5e
topology: v5e:2x2
jax: 0.10.0
libtpu: 0.0.40
codegen_flags: <defaults>
</compile_context>

<pallas_src>
import math

import jax
import jax.numpy as jnp
import numpy as np
from jax.experimental import pallas as pl
from jax.experimental.pallas import tpu as pltpu


def _round_up(x, m):
    return ((x + m - 1) // m) * m


def _vmem_budget():
    """Returns (vmem_limit_bytes, target_tile_rows, min_grid_steps)."""
    try:
        cap = pltpu.get_tpu_info().vmem_capacity_bytes
    except Exception:
        cap = None
    if cap is not None and cap >= 96 * 1024 * 1024:
        # v5e / v6e: 128 MiB physical VMEM -> big lane-dense tiles.
        return 100 * 1024 * 1024, 512, 2
    if cap is not None:
        # v7x-class: 64 MiB per TensorCore -> leave headroom, smaller tiles,
        # more grid steps so double-buffering hides the kv/out DMAs.
        return min(cap - 8 * 1024 * 1024, 56 * 1024 * 1024), 256, 4
    # Unknown part: be conservative.
    return 48 * 1024 * 1024, 256, 4


def _choose_block_b(batch, block_lk, grid_lk, max_rows, min_steps):
    """Largest divisor of batch keeping block_b*block_lk <= max_rows, with a
    preference for enough total grid steps to pipeline / feed both cores."""
    max_bb = max(1, max_rows // block_lk)
    divisors = [d for d in range(1, batch + 1) if batch % d == 0 and d <= max_bb]
    if not divisors:
        divisors = [1]
    bb = max(divisors)
    if grid_lk * (batch // bb) < min_steps:
        for want in (min_steps, 2):
            cands = [d for d in divisors if grid_lk * (batch // d) >= want]
            if cands:
                bb = max(cands)
                break
    return bb


def _make_kernel(block_b, block_lk, d_pad):
    rows = block_b * block_lk

    def kernel(q_ref, kv_ref, wkv_ref, bkv_ref, wf_ref, bf_ref, e_ref, et_ref,
               out_ref):
        cdt = wkv_ref.dtype            # MXU input dtype (bf16 fast / f32 check)

        # K/V projection: one [rows, Dp] @ [Dp, 2Dp] matmul, f32 accumulation,
        # f32 bias add.  (block_lk % 8 == 0 -> the reshape is a layout no-op.)
        kv = kv_ref[...].reshape(rows, d_pad)
        kvp = jnp.dot(kv.astype(cdt), wkv_ref[...],
                      preferred_element_type=jnp.float32) + bkv_ref[...]
        k = kvp[:, :d_pad]                                    # [rows, Dp]
        v = kvp[:, d_pad:]                                    # [rows, Dp]

        # q was projected / scaled host-side ([Bb, 1, Dp], f32): sublane
        # broadcast over this tile's keys, then flatten (layout no-op).
        prod = (q_ref[...] * k.reshape(block_b, block_lk, d_pad))
        prod = prod.reshape(rows, d_pad)

        # Head-sum then head-broadcast via two skinny 0/1 matmuls (exact in
        # bf16 since the query scale was folded into q, not into E).
        scores = jnp.dot(prod.astype(cdt), e_ref[...],
                         preferred_element_type=jnp.float32)  # [rows, Hp]
        attn = jnp.clip(scores, 0.0, 1.0)                     # hardtanh(0, 1)
        gate = jnp.dot(attn.astype(cdt), et_ref[...],
                       preferred_element_type=jnp.float32)    # [rows, Dp]

        context = gate * v
        out = jnp.dot(context.astype(cdt), wf_ref[...],
                      preferred_element_type=jnp.float32) + bf_ref[...]
        out_ref[...] = out.reshape(block_b, block_lk, d_pad).astype(out_ref.dtype)

    return kernel


def vg_multihead_attention(hidden_states, key_value_states, params, num_heads,
                           *, compute_dtype=jnp.bfloat16, block_b=None,
                           resident_weights=None):
    """hidden_states: [B, 1, D]; key_value_states: [B, Lk, D] -> [B, Lk, D].

    compute_dtype=bfloat16 is the production path (all matmuls bf16-in /
    f32-accumulate); float32 is kept strictly as a validation path.
    """
    B, Lq, D = hidden_states.shape
    _, Lk, _ = key_value_states.shape
    assert Lq == 1, "module semantics require query_len == 1"
    assert D % num_heads == 0, "model_dim must be divisible by num_heads"
    head_dim = D // num_heads
    wq, bq, wk, bk, wv, bv, wf, bf = params

    cdt = jnp.dtype(compute_dtype)
    cdt_size = cdt.itemsize
    Dp = _round_up(D, 128)
    Hp = _round_up(num_heads, 128)
    pad_d = Dp - D

    # ---- Q projection hoisted to XLA (one [B,D]@[D,D] matmul), scale folded
    # in, kept f32 (tiny: B x Dp).
    q = (jnp.dot(hidden_states.reshape(B, D), wq,
                 preferred_element_type=jnp.float32) + bq) / math.sqrt(head_dim)
    q_p = jnp.pad(q, ((0, 0), (0, pad_d))) if pad_d else q
    q_p = q_p.reshape(B, 1, Dp)

    # ---- Weights: lane-dense padding, K|V concatenated, compute dtype.
    pad_w = lambda w: jnp.pad(w, ((0, pad_d), (0, pad_d))) if pad_d else w
    pad_b = lambda b: jnp.pad(b, ((0, 0), (0, pad_d))) if pad_d else b
    wkv_p = jnp.concatenate([pad_w(wk), pad_w(wv)], axis=1).astype(cdt)
    wf_p = pad_w(wf).astype(cdt)
    bkv_p = jnp.concatenate([pad_b(bk), pad_b(bv)], axis=1).astype(jnp.float32)
    bf_p = pad_b(bf).astype(jnp.float32)

    # ---- 0/1 head-membership matrices (exact in bf16): E [Dp,Hp], E^T [Hp,Dp].
    ids = np.arange(Dp)
    head_of = np.where(ids < D, ids // head_dim, -1)
    e_np = (head_of[:, None] == np.arange(Hp)[None, :]).astype(np.float32)
    e_mat = jnp.asarray(e_np, dtype=cdt)
    et_mat = jnp.asarray(e_np.T, dtype=cdt)

    # ---- Generation-aware budgets and tiling.
    vmem_limit, target_rows, min_steps = _vmem_budget()

    weight_bytes = ((wkv_p.size + wf_p.size + e_mat.size + et_mat.size) * cdt_size
                    + (bkv_p.size + bf_p.size) * 4)
    if resident_weights is None:
        resident_weights = weight_bytes <= vmem_limit // 3
    # TODO(synk): for very large D where even single-buffered weights overflow
    # VMEM, tile the output dim of Wkv/Wf with an extra grid axis instead of
    # falling back to double-buffered full-block weight specs.

    # Per tile-row VMEM: double-buffered kv (cdt) + out (f32) tiles plus ~14
    # f32 [rows, Dp]-sized compiler temporaries (kvp counts double).
    per_row = Dp * (2 * cdt_size + 2 * 4 + 14 * 4)
    avail = max(vmem_limit - (1 if resident_weights else 2) * weight_bytes,
                8 * per_row)
    rows = int(min(target_rows, max(8, avail // per_row)))
    rows = max(8, (rows // 8) * 8)

    block_lk = int(min(_round_up(Lk, 8), rows))
    Lk_pad = _round_up(Lk, block_lk)
    grid_lk = Lk_pad // block_lk
    if block_b is None:
        block_b = _choose_block_b(B, block_lk, grid_lk, rows, min_steps)
    assert B % block_b == 0
    grid = (B // block_b, grid_lk)

    # ---- Activations: pad + cast host-side so the kernel reads bf16 tiles.
    if pad_d or Lk_pad != Lk:
        kv_pad = jnp.pad(key_value_states,
                         ((0, 0), (0, Lk_pad - Lk), (0, pad_d)))
    else:
        kv_pad = key_value_states
    kv_p = kv_pad.astype(cdt)

    weights = (wkv_p, bkv_p, wf_p, bf_p, e_mat, et_mat)
    if resident_weights:
        # Grid-invariant operands: single VMEM-resident copy (no double-buffer).
        def wspec(arr):
            return pl.BlockSpec(memory_space=pltpu.MemorySpace.VMEM)
    else:
        def wspec(arr):
            return pl.BlockSpec(arr.shape, lambda b, t, _n=arr.ndim: (0,) * _n)

    r_total = B * Lk_pad
    flops = (2 * r_total * Dp * (2 * Dp)       # K/V projection
             + 2 * 2 * r_total * Dp * Hp       # head-sum + head-broadcast
             + 2 * r_total * Dp * Dp)          # final projection
    bytes_accessed = (q_p.size * 4 + kv_p.size * cdt_size
                      + r_total * Dp * 4 + weight_bytes)

    out_p = pl.pallas_call(
        _make_kernel(block_b, block_lk, Dp),
        out_shape=jax.ShapeDtypeStruct((B, Lk_pad, Dp), jnp.float32),
        grid_spec=pltpu.PrefetchScalarGridSpec(
            num_scalar_prefetch=0,
            grid=grid,
            in_specs=[
                pl.BlockSpec((block_b, 1, Dp), lambda b, t: (b, 0, 0)),        # q
                pl.BlockSpec((block_b, block_lk, Dp), lambda b, t: (b, t, 0)),  # kv
            ] + [wspec(w) for w in weights],
            out_specs=pl.BlockSpec((block_b, block_lk, Dp),
                                   lambda b, t: (b, t, 0)),
        ),
        compiler_params=pltpu.CompilerParams(
            dimension_semantics=("parallel", "parallel"),
            vmem_limit_bytes=int(vmem_limit),
        ),
        cost_estimate=pl.CostEstimate(flops=int(flops), transcendentals=0,
                                      bytes_accessed=int(bytes_accessed)),
    )(q_p, kv_p, *weights)

    if pad_d or Lk_pad != Lk:
        return out_p[:, :Lk, :D]
    return out_p


def reference_forward(hidden_states, key_value_states, params, num_heads,
                      compute_dtype=jnp.float32):
    """Pure-JAX mirror of the PyTorch forward (query_len == 1). When
    compute_dtype=bf16, matmul / gate inputs are rounded the same way the
    kernel's fast path rounds them (accumulation stays f32; q stays f32)."""
    wq, bq, wk, bk, wv, bv, wf, bf = params
    B, Lq, D = hidden_states.shape
    Lk = key_value_states.shape[1]
    hd = D // num_heads
    cd = compute_dtype
    r = lambda x: x.astype(cd).astype(jnp.float32)
    mm = lambda x, w: jnp.dot(r(x), r(w), preferred_element_type=jnp.float32)

    # q path stays f32 (the kernel hoists it to the XLA wrapper in f32).
    q = (jnp.dot(hidden_states.reshape(-1, D), wq,
                 preferred_element_type=jnp.float32) + bq) / math.sqrt(hd)
    q = q.reshape(B, Lq, D)
    k = (mm(key_value_states.reshape(-1, D), wk) + bk).reshape(B, Lk, D)
    v = (mm(key_value_states.reshape(-1, D), wv) + bv).reshape(B, Lk, D)

    shape = lambda x: x.reshape(B, -1, num_heads, hd).transpose(0, 2, 1, 3)
    qh, kh, vh = shape(q), shape(k), shape(v)          # [B,H,1,hd]/[B,H,Lk,hd]

    prod = r(qh * kh)                                   # rounded before E matmul
    scores = prod.sum(-1)                               # [B, H, Lk]
    attn = r(jnp.clip(scores, 0.0, 1.0))                # rounded before E^T matmul
    gated = attn[..., None] * vh                        # [B, H, Lk, hd]
    context = gated.transpose(0, 2, 1, 3).reshape(B, Lk, D)
    return (mm(context.reshape(-1, D), wf) + bf).reshape(B, Lk, D)


if __name__ == "__main__":
    B, Lk, D, H = 2, 8, 32, 8  # model_dim=32, num_heads=8 -> head_dim=4

    key = jax.random.PRNGKey(0)
    keys = jax.random.split(key, 10)

    # Deterministic "uniform_(-0.5, 0.5)" init, weights stored as [in, out].
    uni = lambda k, shape: jax.random.uniform(k, shape, jnp.float32, -0.5, 0.5)
    params = (
        uni(keys[0], (D, D)), uni(keys[1], (1, D)),   # Wq, bq
        uni(keys[2], (D, D)), uni(keys[3], (1, D)),   # Wk, bk
        uni(keys[4], (D, D)), uni(keys[5], (1, D)),   # Wv, bv
        uni(keys[6], (D, D)), uni(keys[7], (1, D)),   # Wf, bf
    )

    hidden_states = jax.random.normal(keys[8], (B, 1, D), jnp.float32)
    key_value_states = jax.random.normal(keys[9], (B, Lk, D), jnp.float32)

    def run(compute_dtype, resident):
        return jax.block_until_ready(
            vg_multihead_attention(hidden_states, key_value_states, params, H,
                                   compute_dtype=compute_dtype,
                                   resident_weights=resident))

    def run_with_fallback(compute_dtype):
        try:
            return run(compute_dtype, None)      # auto (resident if it fits)
        except Exception:
            return run(compute_dtype, False)     # pipelined full-block weights

    # Exact-precision validation path.
    out_f32 = run_with_fallback(jnp.float32)
    ref_f32 = reference_forward(hidden_states, key_value_states, params, H,
                                compute_dtype=jnp.float32)
    np.testing.assert_allclose(np.asarray(out_f32), np.asarray(ref_f32),
                               rtol=2e-5, atol=2e-5)

    # bf16-MXU production path (reference uses matched input rounding).
    out_bf16 = run_with_fallback(jnp.bfloat16)
    ref_bf16 = reference_forward(hidden_states, key_value_states, params, H,
                                 compute_dtype=jnp.bfloat16)
    np.testing.assert_allclose(np.asarray(out_bf16), np.asarray(ref_bf16),
                               rtol=2e-2, atol=2e-2)

    print("KERNEL_OK")
</pallas_src>

<mosaic_0001>
module attributes {stable_mosaic.version = 11 : i64} {
  func.func @kernel(%arg0: i32, %arg1: i32, %arg2: memref<1x1x128xf32, #tpu.memory_space<vmem>>, %arg3: memref<1x8x128xf32, #tpu.memory_space<vmem>>, %arg4: memref<128x256xf32, #tpu.memory_space<vmem>>, %arg5: memref<1x256xf32, #tpu.memory_space<vmem>>, %arg6: memref<128x128xf32, #tpu.memory_space<vmem>>, %arg7: memref<1x128xf32, #tpu.memory_space<vmem>>, %arg8: memref<128x128xf32, #tpu.memory_space<vmem>>, %arg9: memref<128x128xf32, #tpu.memory_space<vmem>>, %arg10: memref<1x8x128xf32, #tpu.memory_space<vmem>>) attributes {dimension_semantics = [#tpu.dimension_semantics<parallel>, #tpu.dimension_semantics<parallel>], iteration_bounds = array<i64: 2, 1>, scalar_prefetch = 0 : i64, scratch_operands = 0 : i64, tpu.core_type = #tpu.core_type<tc>, window_params = [{transform_indices = @transform_0, window_bounds = array<i64: 1, 1, 128>}, {transform_indices = @transform_1, window_bounds = array<i64: 1, 8, 128>}, {pipeline_mode = #tpu.pipeline_mode<synchronous>, transform_indices = @transform_2, window_bounds = array<i64: 128, 256>}, {pipeline_mode = #tpu.pipeline_mode<synchronous>, transform_indices = @transform_3, window_bounds = array<i64: 1, 256>}, {pipeline_mode = #tpu.pipeline_mode<synchronous>, transform_indices = @transform_4, window_bounds = array<i64: 128, 128>}, {pipeline_mode = #tpu.pipeline_mode<synchronous>, transform_indices = @transform_5, window_bounds = array<i64: 1, 128>}, {pipeline_mode = #tpu.pipeline_mode<synchronous>, transform_indices = @transform_6, window_bounds = array<i64: 128, 128>}, {pipeline_mode = #tpu.pipeline_mode<synchronous>, transform_indices = @transform_7, window_bounds = array<i64: 128, 128>}, {transform_indices = @transform_8, window_bounds = array<i64: 1, 8, 128>}]} {
    %c0 = arith.constant 0 : index
    %c0_0 = arith.constant 0 : index
    %c0_1 = arith.constant 0 : index
    %0 = vector.load %arg3[%c0, %c0_0, %c0_1] : memref<1x8x128xf32, #tpu.memory_space<vmem>>, vector<1x8x128xf32>
    %1 = vector.shape_cast %0 : vector<1x8x128xf32> to vector<8x128xf32>
    %c0_2 = arith.constant 0 : index
    %c0_3 = arith.constant 0 : index
    %2 = vector.load %arg4[%c0_2, %c0_3] : memref<128x256xf32, #tpu.memory_space<vmem>>, vector<128x256xf32>
    %cst = arith.constant dense<0.000000e+00> : vector<8x256xf32>
    %3 = tpu.matmul %1, %2, %cst {dimension_numbers = #tpu.dot_dimension_numbers<[1], [0], [0], [1], [0, 0, 1, 1], [], []>} : vector<8x128xf32>, vector<128x256xf32>, vector<8x256xf32> -> vector<8x256xf32>
    %c0_4 = arith.constant 0 : index
    %c0_5 = arith.constant 0 : index
    %4 = vector.load %arg5[%c0_4, %c0_5] : memref<1x256xf32, #tpu.memory_space<vmem>>, vector<1x256xf32>
    %5 = vector.broadcast %4 : vector<1x256xf32> to vector<8x256xf32>
    %6 = arith.addf %3, %5 : vector<8x256xf32>
    %7 = vector.extract_strided_slice %6 {offsets = [0, 0], sizes = [8, 128], strides = [1, 1]} : vector<8x256xf32> to vector<8x128xf32>
    %8 = vector.extract_strided_slice %6 {offsets = [0, 128], sizes = [8, 128], strides = [1, 1]} : vector<8x256xf32> to vector<8x128xf32>
    %c0_6 = arith.constant 0 : index
    %c0_7 = arith.constant 0 : index
    %c0_8 = arith.constant 0 : index
    %9 = vector.load %arg2[%c0_6, %c0_7, %c0_8] : memref<1x1x128xf32, #tpu.memory_space<vmem>>, vector<1x1x128xf32>
    %10 = vector.shape_cast %7 : vector<8x128xf32> to vector<1x8x128xf32>
    %11 = vector.broadcast %9 : vector<1x1x128xf32> to vector<1x8x128xf32>
    %12 = arith.mulf %11, %10 : vector<1x8x128xf32>
    %13 = vector.shape_cast %12 : vector<1x8x128xf32> to vector<8x128xf32>
    %c0_9 = arith.constant 0 : index
    %c0_10 = arith.constant 0 : index
    %14 = vector.load %arg8[%c0_9, %c0_10] : memref<128x128xf32, #tpu.memory_space<vmem>>, vector<128x128xf32>
    %cst_11 = arith.constant dense<0.000000e+00> : vector<8x128xf32>
    %15 = tpu.matmul %13, %14, %cst_11 {dimension_numbers = #tpu.dot_dimension_numbers<[1], [0], [0], [1], [0, 0, 1, 1], [], []>} : vector<8x128xf32>, vector<128x128xf32>, vector<8x128xf32> -> vector<8x128xf32>
    %cst_12 = arith.constant 0.000000e+00 : f32
    %cst_13 = arith.constant 1.000000e+00 : f32
    %16 = vector.broadcast %cst_12 : f32 to vector<8x128xf32>
    %17 = arith.maximumf %16, %15 : vector<8x128xf32>
    %18 = vector.broadcast %cst_13 : f32 to vector<8x128xf32>
    %19 = arith.minimumf %18, %17 : vector<8x128xf32>
    %c0_14 = arith.constant 0 : index
    %c0_15 = arith.constant 0 : index
    %20 = vector.load %arg9[%c0_14, %c0_15] : memref<128x128xf32, #tpu.memory_space<vmem>>, vector<128x128xf32>
    %cst_16 = arith.constant dense<0.000000e+00> : vector<8x128xf32>
    %21 = tpu.matmul %19, %20, %cst_16 {dimension_numbers = #tpu.dot_dimension_numbers<[1], [0], [0], [1], [0, 0, 1, 1], [], []>} : vector<8x128xf32>, vector<128x128xf32>, vector<8x128xf32> -> vector<8x128xf32>
    %22 = arith.mulf %21, %8 : vector<8x128xf32>
    %c0_17 = arith.constant 0 : index
    %c0_18 = arith.constant 0 : index
    %23 = vector.load %arg6[%c0_17, %c0_18] : memref<128x128xf32, #tpu.memory_space<vmem>>, vector<128x128xf32>
    %cst_19 = arith.constant dense<0.000000e+00> : vector<8x128xf32>
    %24 = tpu.matmul %22, %23, %cst_19 {dimension_numbers = #tpu.dot_dimension_numbers<[1], [0], [0], [1], [0, 0, 1, 1], [], []>} : vector<8x128xf32>, vector<128x128xf32>, vector<8x128xf32> -> vector<8x128xf32>
    %c0_20 = arith.constant 0 : index
    %c0_21 = arith.constant 0 : index
    %25 = vector.load %arg7[%c0_20, %c0_21] : memref<1x128xf32, #tpu.memory_space<vmem>>, vector<1x128xf32>
    %26 = vector.broadcast %25 : vector<1x128xf32> to vector<8x128xf32>
    %27 = arith.addf %24, %26 : vector<8x128xf32>
    %28 = vector.shape_cast %27 : vector<8x128xf32> to vector<1x8x128xf32>
    %c0_22 = arith.constant 0 : index
    %c0_23 = arith.constant 0 : index
    %c0_24 = arith.constant 0 : index
    %29 = vector.load %arg10[%c0_22, %c0_23, %c0_24] : memref<1x8x128xf32, #tpu.memory_space<vmem>>, vector<1x8x128xf32>
    tpu.vector_store %arg10[%c0_22, %c0_23, %c0_24], %28 {strides = array<i32>} : memref<1x8x128xf32, #tpu.memory_space<vmem>>, vector<1x8x128xf32>,
    return
  }
  func.func @transform_0(%arg0: i32, %arg1: i32) -> (i32, i32, i32) {
    %c0_i32 = arith.constant 0 : i32
    %c0_i32_0 = arith.constant 0 : i32
    %c0_i32_1 = arith.constant 0 : i32
    return %arg0, %c0_i32, %c0_i32_0 : i32, i32, i32
  }
  func.func @transform_1(%arg0: i32, %arg1: i32) -> (i32, i32, i32) {
    %c0_i32 = arith.constant 0 : i32
    %c0_i32_0 = arith.constant 0 : i32
    return %arg0, %arg1, %c0_i32 : i32, i32, i32
  }
  func.func @transform_2(%arg0: i32, %arg1: i32) -> (i32, i32) {
    %c0_i32 = arith.constant 0 : i32
    %c0_i32_0 = arith.constant 0 : i32
    %c0_i32_1 = arith.constant 0 : i32
    return %c0_i32, %c0_i32_0 : i32, i32
  }
  func.func @transform_3(%arg0: i32, %arg1: i32) -> (i32, i32) {
    %c0_i32 = arith.constant 0 : i32
    %c0_i32_0 = arith.constant 0 : i32
    %c0_i32_1 = arith.constant 0 : i32
    return %c0_i32, %c0_i32_0 : i32, i32
  }
  func.func @transform_4(%arg0: i32, %arg1: i32) -> (i32, i32) {
    %c0_i32 = arith.constant 0 : i32
    %c0_i32_0 = arith.constant 0 : i32
    %c0_i32_1 = arith.constant 0 : i32
    return %c0_i32, %c0_i32_0 : i32, i32
  }
  func.func @transform_5(%arg0: i32, %arg1: i32) -> (i32, i32) {
    %c0_i32 = arith.constant 0 : i32
    %c0_i32_0 = arith.constant 0 : i32
    %c0_i32_1 = arith.constant 0 : i32
    return %c0_i32, %c0_i32_0 : i32, i32
  }
  func.func @transform_6(%arg0: i32, %arg1: i32) -> (i32, i32) {
    %c0_i32 = arith.constant 0 : i32
    %c0_i32_0 = arith.constant 0 : i32
    %c0_i32_1 = arith.constant 0 : i32
    return %c0_i32, %c0_i32_0 : i32, i32
  }
  func.func @transform_7(%arg0: i32, %arg1: i32) -> (i32, i32) {
    %c0_i32 = arith.constant 0 : i32
    %c0_i32_0 = arith.constant 0 : i32
    %c0_i32_1 = arith.constant 0 : i32
    return %c0_i32, %c0_i32_0 : i32, i32
  }
  func.func @transform_8(%arg0: i32, %arg1: i32) -> (i32, i32, i32) {
    %c0_i32 = arith.constant 0 : i32
    %c0_i32_0 = arith.constant 0 : i32
    return %arg0, %arg1, %c0_i32 : i32, i32, i32
  }
}

module attributes {stable_mosaic.version = 11 : i64} {
  func.func @kernel(%arg0: i32, %arg1: i32, %arg2: memref<1x1x128xf32, #tpu.memory_space<vmem>>, %arg3: memref<1x8x128xf32, #tpu.memory_space<vmem>>, %arg4: memref<128x256xf32, #tpu.memory_space<vmem>>, %arg5: memref<1x256xf32, #tpu.memory_space<vmem>>, %arg6: memref<128x128xf32, #tpu.memory_space<vmem>>, %arg7: memref<1x128xf32, #tpu.memory_space<vmem>>, %arg8: memref<128x128xf32, #tpu.memory_space<vmem>>, %arg9: memref<128x128xf32, #tpu.memory_space<vmem>>, %arg10: memref<1x8x128xf32, #tpu.memory_space<vmem>>) attributes {dimension_semantics = [#tpu.dimension_semantics<parallel>, #tpu.dimension_semantics<parallel>], iteration_bounds = array<i64: 2, 1>, scalar_prefetch = 0 : i64, scratch_operands = 0 : i64, tpu.core_type = #tpu.core_type<tc>, window_params = [{transform_indices = @transform_0, window_bounds = array<i64: 1, 1, 128>}, {transform_indices = @transform_1, window_bounds = array<i64: 1, 8, 128>}, {pipeline_mode = #tpu.pipeline_mode<synchronous>, transform_indices = @transform_2, window_bounds = array<i64: 128, 256>}, {pipeline_mode = #tpu.pipeline_mode<synchronous>, transform_indices = @transform_3, window_bounds = array<i64: 1, 256>}, {pipeline_mode = #tpu.pipeline_mode<synchronous>, transform_indices = @transform_4, window_bounds = array<i64: 128, 128>}, {pipeline_mode = #tpu.pipeline_mode<synchronous>, transform_indices = @transform_5, window_bounds = array<i64: 1, 128>}, {pipeline_mode = #tpu.pipeline_mode<synchronous>, transform_indices = @transform_6, window_bounds = array<i64: 128, 128>}, {pipeline_mode = #tpu.pipeline_mode<synchronous>, transform_indices = @transform_7, window_bounds = array<i64: 128, 128>}, {transform_indices = @transform_8, window_bounds = array<i64: 1, 8, 128>}]} {
    %c0 = arith.constant 0 : index
    %c0_0 = arith.constant 0 : index
    %c0_1 = arith.constant 0 : index
    %0 = vector.load %arg3[%c0, %c0_0, %c0_1] : memref<1x8x128xf32, #tpu.memory_space<vmem>>, vector<1x8x128xf32>
    %1 = vector.shape_cast %0 : vector<1x8x128xf32> to vector<8x128xf32>
    %c0_2 = arith.constant 0 : index
    %c0_3 = arith.constant 0 : index
    %2 = vector.load %arg4[%c0_2, %c0_3] : memref<128x256xf32, #tpu.memory_space<vmem>>, vector<128x256xf32>
    %cst = arith.constant dense<0.000000e+00> : vector<8x256xf32>
    %3 = tpu.matmul %1, %2, %cst {dimension_numbers = #tpu.dot_dimension_numbers<[1], [0], [0], [1], [0, 0, 1, 1], [], []>} : vector<8x128xf32>, vector<128x256xf32>, vector<8x256xf32> -> vector<8x256xf32>
    %c0_4 = arith.constant 0 : index
    %c0_5 = arith.constant 0 : index
    %4 = vector.load %arg5[%c0_4, %c0_5] : memref<1x256xf32, #tpu.memory_space<vmem>>, vector<1x256xf32>
    %5 = vector.broadcast %4 : vector<1x256xf32> to vector<8x256xf32>
    %6 = arith.addf %3, %5 : vector<8x256xf32>
    %7 = vector.extract_strided_slice %6 {offsets = [0, 0], sizes = [8, 128], strides = [1, 1]} : vector<8x256xf32> to vector<8x128xf32>
    %8 = vector.extract_strided_slice %6 {offsets = [0, 128], sizes = [8, 128], strides = [1, 1]} : vector<8x256xf32> to vector<8x128xf32>
    %c0_6 = arith.constant 0 : index
    %c0_7 = arith.constant 0 : index
    %c0_8 = arith.constant 0 : index
    %9 = vector.load %arg2[%c0_6, %c0_7, %c0_8] : memref<1x1x128xf32, #tpu.memory_space<vmem>>, vector<1x1x128xf32>
    %10 = vector.shape_cast %7 : vector<8x128xf32> to vector<1x8x128xf32>
    %11 = vector.broadcast %9 : vector<1x1x128xf32> to vector<1x8x128xf32>
    %12 = arith.mulf %11, %10 : vector<1x8x128xf32>
    %13 = vector.shape_cast %12 : vector<1x8x128xf32> to vector<8x128xf32>
    %c0_9 = arith.constant 0 : index
    %c0_10 = arith.constant 0 : index
    %14 = vector.load %arg8[%c0_9, %c0_10] : memref<128x128xf32, #tpu.memory_space<vmem>>, vector<128x128xf32>
    %cst_11 = arith.constant dense<0.000000e+00> : vector<8x128xf32>
    %15 = tpu.matmul %13, %14, %cst_11 {dimension_numbers = #tpu.dot_dimension_numbers<[1], [0], [0], [1], [0, 0, 1, 1], [], []>} : vector<8x128xf32>, vector<128x128xf32>, vector<8x128xf32> -> vector<8x128xf32>
    %cst_12 = arith.constant 0.000000e+00 : f32
    %cst_13 = arith.constant 1.000000e+00 : f32
    %16 = vector.broadcast %cst_12 : f32 to vector<8x128xf32>
    %17 = arith.maximumf %16, %15 : vector<8x128xf32>
    %18 = vector.broadcast %cst_13 : f32 to vector<8x128xf32>
    %19 = arith.minimumf %18, %17 : vector<8x128xf32>
    %c0_14 = arith.constant 0 : index
    %c0_15 = arith.constant 0 : index
    %20 = vector.load %arg9[%c0_14, %c0_15] : memref<128x128xf32, #tpu.memory_space<vmem>>, vector<128x128xf32>
    %cst_16 = arith.constant dense<0.000000e+00> : vector<8x128xf32>
    %21 = tpu.matmul %19, %20, %cst_16 {dimension_numbers = #tpu.dot_dimension_numbers<[1], [0], [0], [1], [0, 0, 1, 1], [], []>} : vector<8x128xf32>, vector<128x128xf32>, vector<8x128xf32> -> vector<8x128xf32>
    %22 = arith.mulf %21, %8 : vector<8x128xf32>
    %c0_17 = arith.constant 0 : index
    %c0_18 = arith.constant 0 : index
    %23 = vector.load %arg6[%c0_17, %c0_18] : memref<128x128xf32, #tpu.memory_space<vmem>>, vector<128x128xf32>
    %cst_19 = arith.constant dense<0.000000e+00> : vector<8x128xf32>
    %24 = tpu.matmul %22, %23, %cst_19 {dimension_numbers = #tpu.dot_dimension_numbers<[1], [0], [0], [1], [0, 0, 1, 1], [], []>} : vector<8x128xf32>, vector<128x128xf32>, vector<8x128xf32> -> vector<8x128xf32>
    %c0_20 = arith.constant 0 : index
    %c0_21 = arith.constant 0 : index
    %25 = vector.load %arg7[%c0_20, %c0_21] : memref<1x128xf32, #tpu.memory_space<vmem>>, vector<1x128xf32>
    %26 = vector.broadcast %25 : vector<1x128xf32> to vector<8x128xf32>
    %27 = arith.addf %24, %26 : vector<8x128xf32>
    %28 = vector.shape_cast %27 : vector<8x128xf32> to vector<1x8x128xf32>
    %c0_22 = arith.constant 0 : index
    %c0_23 = arith.constant 0 : index
    %c0_24 = arith.constant 0 : index
    %29 = vector.load %arg10[%c0_22, %c0_23, %c0_24] : memref<1x8x128xf32, #tpu.memory_space<vmem>>, vector<1x8x128xf32>
    tpu.vector_store %arg10[%c0_22, %c0_23, %c0_24], %28 {strides = array<i32>} : memref<1x8x128xf32, #tpu.memory_space<vmem>>, vector<1x8x128xf32>,
    return
  }
  func.func @transform_0(%arg0: i32, %arg1: i32) -> (i32, i32, i32) {
    %c0_i32 = arith.constant 0 : i32
    %c0_i32_0 = arith.constant 0 : i32
    %c0_i32_1 = arith.constant 0 : i32
    return %arg0, %c0_i32, %c0_i32_0 : i32, i32, i32
  }
  func.func @transform_1(%arg0: i32, %arg1: i32) -> (i32, i32, i32) {
    %c0_i32 = arith.constant 0 : i32
    %c0_i32_0 = arith.constant 0 : i32
    return %arg0, %arg1, %c0_i32 : i32, i32, i32
  }
  func.func @transform_2(%arg0: i32, %arg1: i32) -> (i32, i32) {
    %c0_i32 = arith.constant 0 : i32
    %c0_i32_0 = arith.constant 0 : i32
    %c0_i32_1 = arith.constant 0 : i32
    return %c0_i32, %c0_i32_0 : i32, i32
  }
  func.func @transform_3(%arg0: i32, %arg1: i32) -> (i32, i32) {
    %c0_i32 = arith.constant 0 : i32
    %c0_i32_0 = arith.constant 0 : i32
    %c0_i32_1 = arith.constant 0 : i32
    return %c0_i32, %c0_i32_0 : i32, i32
  }
  func.func @transform_4(%arg0: i32, %arg1: i32) -> (i32, i32) {
    %c0_i32 = arith.constant 0 : i32
    %c0_i32_0 = arith.constant 0 : i32
    %c0_i32_1 = arith.constant 0 : i32
    return %c0_i32, %c0_i32_0 : i32, i32
  }
  func.func @transform_5(%arg0: i32, %arg1: i32) -> (i32, i32) {
    %c0_i32 = arith.constant 0 : i32
    %c0_i32_0 = arith.constant 0 : i32
    %c0_i32_1 = arith.constant 0 : i32
    return %c0_i32, %c0_i32_0 : i32, i32
  }
  func.func @transform_6(%arg0: i32, %arg1: i32) -> (i32, i32) {
    %c0_i32 = arith.constant 0 : i32
    %c0_i32_0 = arith.constant 0 : i32
    %c0_i32_1 = arith.constant 0 : i32
    return %c0_i32, %c0_i32_0 : i32, i32
  }
  func.func @transform_7(%arg0: i32, %arg1: i32) -> (i32, i32) {
    %c0_i32 = arith.constant 0 : i32
    %c0_i32_0 = arith.constant 0 : i32
    %c0_i32_1 = arith.constant 0 : i32
    return %c0_i32, %c0_i32_0 : i32, i32
  }
  func.func @transform_8(%arg0: i32, %arg1: i32) -> (i32, i32, i32) {
    %c0_i32 = arith.constant 0 : i32
    %c0_i32_0 = arith.constant 0 : i32
    return %arg0, %arg1, %c0_i32 : i32, i32, i32
  }
}

</mosaic_0001>

<bundles_post_ra>
// kernel: tpu_custom_call.1
= control target key start
LH: loop header
LB: loop body
LE: loop exit
PB: predicated region body
PF: predicated region fallthrough
CT: control target
= control target key end

     0   :  { %s1469_s0 = inlined_call_operand.hbm [shape: f32[2,1,128], index: 0, kind: input, shape index: {}]   ;;  %s1470_s1 = inlined_call_operand.hbm [shape: f32[2,8,128], index: 1, kind: input, shape index: {}]   ;;  %s1471_s2 = inlined_call_operand.hbm [shape: f32[128,256], index: 2, kind: input, shape index: {}]   ;;  %s1472_s3 = inlined_call_operand.vmem [shape: f32[1,256], index: 3, kind: input, shape index: {}]   ;;  %s1473_s4 = inlined_call_operand.hbm [shape: f32[128,128], index: 4, kind: input, shape index: {}]   ;;  %s1474_s5 = inlined_call_operand.vmem [shape: f32[1,128], index: 5, kind: input, shape index: {}]   ;;  %s1475_s6 = inlined_call_operand.hbm [shape: f32[128,128], index: 6, kind: input, shape index: {}]   ;;  %s1476_s7 = inlined_call_operand.hbm [shape: f32[128,128], index: 7, kind: input, shape index: {}]   ;;  %s1477_s8 = inlined_call_operand.hbm [shape: f32[2,8,128], index: 8, kind: output, shape index: {}]  }
   0x1   :  { %1481 = sst [smem:[#allocation24_spill]] %s1471_s2 }
   0x2   :  { %1482 = sst [smem:[#allocation25_spill]] %s1473_s4 }
   0x3   :  { %1483 = sst [smem:[#allocation26_spill]] %s1475_s6 }
   0x4   :  { %1484 = sst [smem:[#allocation27_spill]] %s1476_s7 }
   0x5   :  { %13 = vsyncpa [#allocation3], 0 }
   0x6   :  { %15 = vsyncpa [#allocation3 + $0x1], 0 }
   0x7   :  { %16 = vsyncpa [#allocation6], 0 }
   0x8   :  { %18 = vsyncpa [#allocation6 + $0x1], 0 }
   0x9   :  { %19 = vsyncpa [#allocation9], 0 }
   0xa   :  { %20 = vsyncpa [#allocation12], 0 }
   0xb   :  { %21 = vsyncpa [#allocation4], 0 }
   0xc   :  { %23 = vsyncpa [#allocation4 + $0x1], 0  ;;  %s1263_s27 = smov 0   ;;  %s1265_s28 = smov 0  }
   0xd   :  { %s1267_s29 = smov 0   ;;  %s1269_s30 = smov 0  }
   0xe   :  { %s1271_s9 = smov 0   ;;  %s1273_s10 = smov 0  }
   0xf LB: > { %1485 = sst [smem:[#allocation20_spill]] %s1196_s29  ;;  %s1294_s11 = sadd.s32 4294967295, %s1208_s10   ;;  %s1208_s10 = sphi %s1273_s10, %s29_s10   ;;  %s1204_s9 = sphi %s1271_s9, %s1506_s9   ;;  %s1200_s30 = sphi %s1269_s30, %s1505_s30   ;;  %s1196_s29 = sphi %s1267_s29, %s1501_s29   ;;  %s1192_s28 = sphi %s1265_s28, %s1504_s28   ;;  %s1188_s27 = sphi %s1263_s27, %s1503_s27  }
  0x10   : > { %p797_p0 = scmp.ge.s32.totalorder %s1208_s10, 1  ;;  %p62_p1 = scmp.eq.s32.totalorder %s1294_s11, 0 }
  0x11   : > { %p254_p2 = scmp.lt.s32.totalorder %s1208_s10, 3  ;;  %s1486_s2 = sld [smem:[#allocation24_spill]] }
  0x12   : > { %s1210_s16 = smov [#allocation7]   ;;  %p802_p6 = scmp.ge.s32.totalorder %s1208_s10, 2 }
  0x13   : > { %p1302_p3 = pnand %p797_p0, %p254_p2  ;;  %s267_s17 = sshll.u32 %s1210_s16, 4  ;;  %s268_s17 = int_to_ptr.vmem [resolvable:$true] %s267_s17 }
  0x14   : > { %s1489_s4 = sld [smem:[#allocation25_spill]]  ;;  %s1211_s22 = smov 256  }
  0x15   : > { %p838_p4 = pneg %p1302_p3  ;;  %s1212_s23 = smov 16  }
  0x16   : > { %s1213_s24 = smov [#allocation8]   ;;  %s1214_s26 = smov 128  }
  0x17   : > { %s265_s14 = sshll.u32 %s1486_s2, 4  ;;  %p1310_p5 = pnand %p838_p4, %p62_p1  ;;  %s266_s14 = int_to_ptr.hbm [resolvable:$true] %s265_s14 }
  0x18   : > { %s284_s25 = sshll.u32 %s1213_s24, 4  ;;  %s1215_s12 = smov 8   ;;  %s285_s25 = int_to_ptr.vmem [resolvable:$true] %s284_s25 }
  0x19   : > { %841 = dma.hbm_to_vmem [thread:$0]  (!%p1310_p5), %s266_s14, 4096, %s268_s17, [#allocation6], %s1211_s22, %s1211_s22, %s1212_s23  }
  0x1a   : > { %s282_s21 = sshll.u32 %s1489_s4, 4  ;;  %s1490_s6 = sld [smem:[#allocation26_spill]]  ;;  %s283_s21 = int_to_ptr.hbm [resolvable:$true] %s282_s21 }
  0x1b   : > { %844 = dma.hbm_to_vmem [thread:$0]  (!%p1310_p5), %s283_s21, 2048, %s285_s25, [#allocation9], %s1214_s26, %s1214_s26, %s1215_s12  }
  0x1c   : > { %s1216_s14 = smov [#allocation10]   ;;  %s1491_s7 = sld [smem:[#allocation27_spill]] }
  0x1d   : > { %s301_s17 = sshll.u32 %s1216_s14, 4  ;;  %s1217_s21 = smov [#allocation11]   ;;  %s302_s17 = int_to_ptr.vmem [resolvable:$true] %s301_s17 }
  0x1e   : > { %s315_s24 = sshll.u32 %s1217_s21, 4  ;;  %s796_s25 = sadd.s32 4294967294, %s1208_s10   ;;  %s316_s24 = int_to_ptr.vmem [resolvable:$true] %s315_s24 }
  0x1f   : > { %s41_s13 = sadd.s32 1, %s1204_s9  ;;  %s48_s16 = sadd.s32 1, %s1196_s29 }
  0x20   : > { %s299_s19 = sshll.u32 %s1490_s6, 4  ;;  %p43_p7 = scmp.ge.s32.totalorder %s41_s13, 2  ;;  %s300_s19 = int_to_ptr.hbm [resolvable:$true] %s299_s19 }
  0x21   : > { %847 = dma.hbm_to_vmem [thread:$0]  (!%p1310_p5), %s300_s19, 2048, %s302_s17, [#allocation9], %s1214_s26, %s1214_s26, %s1215_s12  }
  0x22   : > { %s313_s23 = sshll.u32 %s1491_s7, 4  ;;  %p55_p8 = scmp.ne.s32.totalorder %s1196_s29, %s1192_s28  ;;  %s314_s23 = int_to_ptr.hbm [resolvable:$true] %s313_s23 }
  0x23   : > { %850 = dma.hbm_to_vmem [thread:$0]  (!%p1310_p5), %s314_s23, 2048, %s316_s24, [#allocation12], %s1214_s26, %s1214_s26, %s1215_s12  }
  0x24   : > { %p56_p9 = scmp.eq.s32.totalorder %s1208_s10, 0  ;;  %s1508_s13 = smov (%p43_p7, %s41_s13), 0 }
  0x25   : > { %1492 = sst [smem:[#allocation21_spill]] %s1508_s13  ;;  %p61_p11 = scmp.ne.s32.totalorder %s1192_s28, %s1188_s27 }
  0x26   : > { %p1340_p10 = por %p56_p9, %p55_p8  ;;  %s45_s18 = ssub.s32 %s1204_s9, %s1508_s13 }
  0x27   : > { %p241_p12 = scmp.eq.s32.totalorder %s1294_s11, 1  ;;  %p46_p13 = scmp.eq.s32.totalorder %s45_s18, 0 }
  0x28   : > { %p1351_p0 = por %p62_p1, %p61_p11  ;;  %p247_p4 = scmp.eq.s32.totalorder %s796_s25, 1 }
  0x29   : > { %p1355_p2 = por %p241_p12, %p55_p8  ;;  %p866_p7 = scmp.lt.s32.totalorder %s1208_s10, 2 }
  0x2a   : > { %s1360_s14 = scalar_select %p46_p13, %s1196_s29, %s48_s16  }
  0x2b   : > { %p1362_p5 = por %p247_p4, %p61_p11  ;;  %s329_s20 = sand.u32 1, %s1196_s29  }
  0x2c   : > { %1496 = sst [smem:[#allocation22_spill]] %s1360_s14  ;;  %s335_s21 = scalar_lea.hbm %s1469_s0, %s1204_s9 }
  0x2d   : > { %s1497_s17 = scalar_select %p1362_p5, 1, 0 }
  0x2e   : > { %s337_s24 = sshll.u32 %s335_s21, 4  ;;  %s332_s18 = scalar_lea.vmem [#allocation2], %s329_s20  ;;  %s338_s24 = int_to_ptr.hbm [resolvable:$true] %s337_s24 }
  0x2f   : > { %1498 = sst [smem:[#allocation23_spill]] %s1497_s17  ;;  %s339_s2 = sshll.u32 %s332_s18, 4  ;;  %s340_s2 = int_to_ptr.vmem [resolvable:$true] %s339_s2 }
  0x30   : > { %p852_p8 = pnand %p866_p7, %p1340_p10  ;;  %s346_s25 = sand.u32 1, %s1208_s10  }
  0x31   : > { %s803_s16 = sshll.u32 %s329_s20, 3  ;;  %s330_s4 = scalar_lea.sflag [#allocation3], %s329_s20 }
  0x32   : > { %854 = dma.hbm_to_vmem [thread:$0]  (!%p852_p8), %s338_s24, 16, %s340_s2, %s330_s4  }
  0x33   : > { %s804_s6 = sshll.u32 %s1204_s9, 3  ;;  %s350_s7 = scalar_lea.vmem [#allocation5], %s803_s16 }
  0x34   : > { %s359_s13 = sshll.u32 %s350_s7, 4  ;;  %s355_s17 = scalar_lea.hbm %s1470_s1, %s804_s6  ;;  %s360_s13 = int_to_ptr.vmem [resolvable:$true] %s359_s13 }
  0x35   : > { %s357_s22 = sshll.u32 %s355_s17, 4  ;;  %s347_s23 = scalar_lea.sflag [#allocation6], %s346_s25  ;;  %s358_s22 = int_to_ptr.hbm [resolvable:$true] %s357_s22 }
  0x36   : > { %857 = dma.hbm_to_vmem [thread:$0]  (!%p852_p8), %s358_s22, 128, %s360_s13, %s347_s23  }
  0x37   : > { %368 = sbr.rel (%p1302_p3) target bundleno = 633 (0x279), region = 52  ;;  %s1382_s19 = sand.u32 (!%p1302_p3), 1, %s1192_s28  }
  0x38   : > { %s371_s2 = scalar_lea.sflag (!%p1302_p3), [#allocation3], %s1382_s19  ;;  %s373_s4 = scalar_lea.vmem (!%p1302_p3), [#allocation2], %s1382_s19 }
  0x3c   : > { %1163 = dma.done.wait (%p1351_p0), %s371_s2, 16  }
  0x3d   : > { %1165 = vsyncadd (%p1351_p0), %s371_s2, 4294967280  ;;  %s379_s6 = sand.u32 1, %s1294_s11   ;;  %s806_s7 = sshll.u32 %s1382_s19, 3 }
  0x3e   : > { %s380_s29 = scalar_lea.sflag [#allocation6], %s379_s6  ;;  %s1394_s15 = scalar_lea.vmem [#allocation5], %s806_s7 }
  0x3f   : > { %1167 = dma.done.wait (%p1351_p0), %s380_s29, 128  }
  0x40   : > { %1169 = vsyncadd (%p1351_p0), %s380_s29, 4294967168 }
  0x41   : > { %1171 = dma.done.wait (%p62_p1), [#allocation6], 4096  }
  0x42   : > { %1173 = vsyncadd (%p62_p1), [#allocation6], 4294963200 }
  0x43   : > { %1175 = dma.done.wait (%p62_p1), [#allocation9], 4096  }
  0x44   : > { %1177 = vsyncadd (%p62_p1), [#allocation9], 4294963200 }
  0x45   : > { %1179 = dma.done.wait (%p62_p1), [#allocation12], 2048  }
  0x46   : > { %1181 = vsyncadd (%p62_p1), [#allocation12], 4294965248  ;;  %v472_v0 = vld [vmem:[#allocation7 + $0xf0] sm:$0xff]  ;;  %v470_v1 = vld [vmem:[#allocation7 + $0xe0] sm:$0xff]  ;;  %s813_s26 = sshll.u32 %s1200_s30, 3  ;;  %s440_s18 = scalar_lea.vmem [#allocation13], %s806_s7 }
  0x47   : > { %480 = vmatpush.msra.mxu0 %v472_v0  ;;  %v468_v2 = vld [vmem:[#allocation7 + $0xd0] sm:$0xff]  ;;  %v466_v3 = vld [vmem:[#allocation7 + $0xc0] sm:$0xff]  ;;  %v540_v4 = vld [vmem:[#allocation10 + $0x78] sm:$0xff]  ;;  %s653_s20 = scalar_lea.hbm %s1477_s8, %s813_s26  ;;  %s655_s25 = sshll.u32 %s440_s18, 4  ;;  %s656_s25 = int_to_ptr.vmem [resolvable:$true] %s655_s25 }
  0x48   : > { %v464_v5 = vld [vmem:[#allocation7 + $0xb0] sm:$0xff]  ;;  %541 = vmatpush.msra.mxu2 %v540_v4  ;;  %v538_v7 = vld [vmem:[#allocation10 + $0x68] sm:$0xff]  ;;  %v462_v8 = vld [vmem:[#allocation7 + $0xa0] sm:$0xff]  ;;  %s657_s16 = sshll.u32 %s653_s20, 4  ;;  %s642_s22 = scalar_lea.sflag [#allocation4], %s1382_s19  ;;  %s658_s16 = int_to_ptr.hbm [resolvable:$true] %s657_s16 }
  0x49   : > { %481 = vmatpush.msra.mxu0 %v470_v1  ;;  %v539_v6 = vld [vmem:[#allocation10 + $0x70] sm:$0xff]  ;;  %v537_v9 = vld [vmem:[#allocation10 + $0x60] sm:$0xff]  ;;  %v536_v11 = vld [vmem:[#allocation10 + $0x58] sm:$0xff]  ;;  %s1124_s30 = sshra.s32 %s658_s16, 4  ;;  %s1130_s6 = scalar_lea.hbm %s1477_s8, 16  ;;  %s1125_s30 = int_to_ptr.hbm [resolvable:$true] %s1124_s30 }
  0x4a   : > { %542 = vmatpush.msra.mxu2 %v539_v6  ;;  %v460_v10 = vld [vmem:[#allocation7 + $0x90] sm:$0xff]  ;;  %v458_v12 = vld [vmem:[#allocation7 + $0x80] sm:$0xff]  ;;  %v534_v15 = vld [vmem:[#allocation10 + $0x48] sm:$0xff]  ;;  %s1126_s23 = scalar_lea.hbm %s1125_s30, 8  ;;  %p1131_p10 = scmp.lt.s32.totalorder %s1125_s30, %s1477_s8 }
  0x4b   : > { %482 = vmatpush.msra.mxu0 %v468_v2  ;;  %v535_v13 = vld [vmem:[#allocation10 + $0x50] sm:$0xff]  ;;  %v454_v16 = vld [vmem:[#allocation7 + $0x60] sm:$0xff]  ;;  %v532_v19 = vld [vmem:[#allocation10 + $0x38] sm:$0xff]  ;;  %p1127_p1 = scmp.ne.s32.totalorder %s1125_s30, %s1126_s23  ;;  %p1132_p11 = scmp.lt.s32.totalorder %s1130_s6, %s1126_s23 }
  0x4c   : > { %543 = vmatpush.msra.mxu2 %v538_v7  ;;  %v456_v14 = vld [vmem:[#allocation7 + $0x70] sm:$0xff]  ;;  %v533_v17 = vld [vmem:[#allocation10 + $0x40] sm:$0xff]  ;;  %v530_v23 = vld [vmem:[#allocation10 + $0x28] sm:$0xff] }
  0x4d   : > { %483 = vmatpush.msra.mxu0 %v466_v3  ;;  %v452_v18 = vld [vmem:[#allocation7 + $0x50] sm:$0xff]  ;;  %v450_v20 = vld [vmem:[#allocation7 + $0x40] sm:$0xff]  ;;  %v528_v27 = vld [vmem:[#allocation10 + $0x18] sm:$0xff]  ;;  %p1128_p3 = pnand %p1127_p1, %p1355_p2  ;;  %p1133_p12 = por %p1132_p11, %p1131_p10 }
  0x4e   : > { %544 = vmatpush.msra.mxu2 %v537_v9  ;;  %v531_v21 = vld [vmem:[#allocation10 + $0x30] sm:$0xff]  ;;  %v446_v24 = vld [vmem:[#allocation7 + $0x20] sm:$0xff]  ;;  %v526_v31 = vld [vmem:[#allocation10 + $0x8] sm:$0xff] }
  0x4f   : > { %484 = vmatpush.msra.mxu0 %v464_v5  ;;  %v448_v22 = vld [vmem:[#allocation7 + $0x30] sm:$0xff]  ;;  %v529_v25 = vld [vmem:[#allocation10 + $0x20] sm:$0xff]  ;;  %v578_v33 = vld [vmem:[#allocation11 + $0x78] sm:$0xff]  ;;  %p1129_p9 = pneg %p1128_p3 }
  0x50   : > { %545 = vmatpush.msra.mxu2 %v536_v11  ;;  %v444_v26 = vld [vmem:[#allocation7 + $0x10] sm:$0xff]  ;;  %v442_v28 = vld [vmem:[#allocation7] sm:$0xff]  ;;  %v473_v35 = vld [vmem:[#allocation7 + $0xf8] sm:$0xff]  ;;  %579 = vmatpush.msra.mxu3 %v578_v33 }
  0x51   : > { %485 = vmatpush.msra.mxu0 %v462_v8  ;;  %v1413_v29 = vld [vmem:[%s1394_s15] sm:$0xff]  ;;  %v525_v32 = vld [vmem:[#allocation10] sm:$0xff]  ;;  %500 = vmatpush.msra.mxu1 %v473_v35  ;;  %v471_v36 = vld [vmem:[#allocation7 + $0xe8] sm:$0xff]  ;;  %p1134_p13 = pnand %p1133_p12, %p1129_p9 }
  0x52   : > { %546 = vmatpush.msra.mxu2 %v535_v13  ;;  %v527_v30 = vld [vmem:[#allocation10 + $0x10] sm:$0xff]  ;;  %v576_v37 = vld [vmem:[#allocation11 + $0x68] sm:$0xff]  ;;  %v469_v38 = vld [vmem:[#allocation7 + $0xd8] sm:$0xff] }
  0x53   : > { %486 = vmatpush.msra.mxu0 %v460_v10  ;;  %v577_v34 = vld [vmem:[#allocation11 + $0x70] sm:$0xff]  ;;  %501 = vmatpush.msra.mxu1 %v471_v36  ;;  %v575_v39 = vld [vmem:[#allocation11 + $0x60] sm:$0xff]  ;;  %v467_v40 = vld [vmem:[#allocation7 + $0xc8] sm:$0xff] }
  0x54   : > { %547 = vmatpush.msra.mxu2 %v534_v15  ;;  %580 = vmatpush.msra.mxu3 %v577_v34  ;;  %v574_v41 = vld [vmem:[#allocation11 + $0x58] sm:$0xff]  ;;  %v573_v43 = vld [vmem:[#allocation11 + $0x50] sm:$0xff]  ;;  %v463_v44 = vld [vmem:[#allocation7 + $0xa8] sm:$0xff] }
  0x55   : > { %487 = vmatpush.msra.mxu0 %v458_v12  ;;  %502 = vmatpush.msra.mxu1 %v469_v38  ;;  %v465_v42 = vld [vmem:[#allocation7 + $0xb8] sm:$0xff]  ;;  %v572_v45 = vld [vmem:[#allocation11 + $0x48] sm:$0xff]  ;;  %v571_v47 = vld [vmem:[#allocation11 + $0x40] sm:$0xff] }
  0x56   : > { %548 = vmatpush.msra.mxu2 %v533_v17  ;;  %581 = vmatpush.msra.mxu3 %v576_v37  ;;  %v461_v46 = vld [vmem:[#allocation7 + $0x98] sm:$0xff]  ;;  %v459_v48 = vld [vmem:[#allocation7 + $0x88] sm:$0xff]  ;;  %v569_v51 = vld [vmem:[#allocation11 + $0x30] sm:$0xff] }
  0x57   : > { %488 = vmatpush.msra.mxu0 %v456_v14  ;;  %503 = vmatpush.msra.mxu1 %v467_v40  ;;  %v570_v49 = vld [vmem:[#allocation11 + $0x38] sm:$0xff]  ;;  %v455_v52 = vld [vmem:[#allocation7 + $0x68] sm:$0xff]  ;;  %v567_v55 = vld [vmem:[#allocation11 + $0x20] sm:$0xff] }
  0x58   : > { %549 = vmatpush.msra.mxu2 %v532_v19  ;;  %582 = vmatpush.msra.mxu3 %v575_v39  ;;  %v457_v50 = vld [vmem:[#allocation7 + $0x78] sm:$0xff]  ;;  %v568_v53 = vld [vmem:[#allocation11 + $0x28] sm:$0xff]  ;;  %v565_v0 = vld [vmem:[#allocation11 + $0x10] sm:$0xff] }
  0x59   : > { %489 = vmatpush.msra.mxu0 %v454_v16  ;;  %504 = vmatpush.msra.mxu1 %v465_v42  ;;  %v453_v54 = vld [vmem:[#allocation7 + $0x58] sm:$0xff]  ;;  %v451_v56 = vld [vmem:[#allocation7 + $0x48] sm:$0xff]  ;;  %v563_v4 = vld [vmem:[#allocation11] sm:$0xff] }
  0x5a   : > { %550 = vmatpush.msra.mxu2 %v531_v21  ;;  %583 = vmatpush.msra.mxu3 %v574_v41  ;;  %v1419_v57 = vld [vmem:[%s1472_s3] sm:$0x3]  ;;  %v566_v58 = vld [vmem:[#allocation11 + $0x18] sm:$0xff]  ;;  %v614_v8 = vld [vmem:[#allocation8 + $0x70] sm:$0xff] }
  0x5b   : > { %490 = vmatpush.msra.mxu0 %v452_v18  ;;  %505 = vmatpush.msra.mxu1 %v463_v44  ;;  %v476_v59 = vperm.slane %v1419_v57, 0  ;;  %v928_v60 = vld [vmem:[%s373_s4] ss:$0 sm:$0xff]  ;;  %v449_v1 = vld [vmem:[#allocation7 + $0x38] sm:$0xff]  ;;  %v612_v10 = vld [vmem:[#allocation8 + $0x60] sm:$0xff] }
  0x5c   : > { %551 = vmatpush.msra.mxu2 %v530_v23  ;;  %584 = vmatpush.msra.mxu3 %v573_v43  ;;  %v564_v2 = vld [vmem:[#allocation11 + $0x8] sm:$0xff]  ;;  %v445_v5 = vld [vmem:[#allocation7 + $0x18] sm:$0xff]  ;;  %v610_v12 = vld [vmem:[#allocation8 + $0x50] sm:$0xff] }
  0x5d   : > { %491 = vmatpush.msra.mxu0 %v450_v20  ;;  %506 = vmatpush.msra.mxu1 %v461_v46  ;;  %v447_v3 = vld [vmem:[#allocation7 + $0x28] sm:$0xff]  ;;  %v615_v7 = vld [vmem:[#allocation8 + $0x78] sm:$0xff]  ;;  %v608_v14 = vld [vmem:[#allocation8 + $0x40] sm:$0xff] }
  0x5e   : > { %552 = vmatpush.msra.mxu2 %v529_v25  ;;  %585 = vmatpush.msra.mxu3 %v572_v45  ;;  %v443_v6 = vld [vmem:[#allocation7 + $0x8] sm:$0xff]  ;;  %v611_v11 = vld [vmem:[#allocation8 + $0x58] sm:$0xff]  ;;  %v606_v16 = vld [vmem:[#allocation8 + $0x30] sm:$0xff] }
  0x5f   : > { %492 = vmatpush.msra.mxu0 %v448_v22  ;;  %507 = vmatpush.msra.mxu1 %v459_v48  ;;  %v613_v9 = vld [vmem:[#allocation8 + $0x68] sm:$0xff]  ;;  %v607_v15 = vld [vmem:[#allocation8 + $0x38] sm:$0xff]  ;;  %v604_v18 = vld [vmem:[#allocation8 + $0x20] sm:$0xff] }
  0x60   : > { %553 = vmatpush.msra.mxu2 %v528_v27  ;;  %586 = vmatpush.msra.mxu3 %v571_v47  ;;  %v609_v13 = vld [vmem:[#allocation8 + $0x48] sm:$0xff]  ;;  %v603_v19 = vld [vmem:[#allocation8 + $0x18] sm:$0xff]  ;;  %v602_v23 = vld [vmem:[#allocation8 + $0x10] sm:$0xff] }
  0x61   : > { %493 = vmatpush.msra.mxu0 %v446_v24  ;;  %508 = vmatpush.msra.mxu1 %v457_v50  ;;  %v605_v17 = vld [vmem:[#allocation8 + $0x28] sm:$0xff]  ;;  %v600_v25 = vld [vmem:[#allocation8] sm:$0xff] }
  0x62   : > { %554 = vmatpush.msra.mxu2 %v527_v30  ;;  %587 = vmatpush.msra.mxu3 %v570_v49  ;;  %v601_v24 = vld [vmem:[#allocation8 + $0x8] sm:$0xff] }
  0x63   : > { %494 = vmatpush.msra.mxu0 %v444_v26  ;;  %509 = vmatpush.msra.mxu1 %v455_v52  ;;  %v477_v26 = vperm.slane %v1419_v57, 1 }
  0x64   : > { %555 = vmatpush.msra.mxu2 %v526_v31  ;;  %588 = vmatpush.msra.mxu3 %v569_v51  ;;  %v929_v31 = vld [vmem:[%s1474_s5] ss:$0 sm:$0xff] }
  0x65   : > { %495 = vmatpush.msra.mxu0 %v442_v28  ;;  %510 = vmatpush.msra.mxu1 %v453_v54 }
  0x66   : > { %496 = vmatmul.f32.vlgmr.msra.gmra.mxu0 %v1413_v29  ;;  %556 = vmatpush.msra.mxu2 %v525_v32 }
  0x67   : > { %589 = vmatpush.msra.mxu3 %v568_v53  ;;  %511 = vmatpush.msra.mxu1 %v451_v56 }
  0x68   : > { %620 = vmatpush.msrb.mxu0 %v615_v7 }
  0x69   : > { %590 = vmatpush.msra.mxu3 %v567_v55  ;;  %512 = vmatpush.msra.mxu1 %v449_v1 }
  0x6a   : > { %621 = vmatpush.msrb.mxu0 %v614_v8 }
  0x6b   : > { %591 = vmatpush.msra.mxu3 %v566_v58  ;;  %513 = vmatpush.msra.mxu1 %v447_v3 }
  0x6c   : > { %622 = vmatpush.msrb.mxu0 %v613_v9 }
  0x6d   : > { %592 = vmatpush.msra.mxu3 %v565_v0  ;;  %514 = vmatpush.msra.mxu1 %v445_v5 }
  0x6e   : > { %623 = vmatpush.msrb.mxu0 %v612_v10 }
  0x6f   : > { %593 = vmatpush.msra.mxu3 %v564_v2  ;;  %515 = vmatpush.msra.mxu1 %v443_v6 }
  0x70   : > { %516 = vmatmul.f32.vlgmr.msra.gmra.mxu1 %v1413_v29  ;;  %624 = vmatpush.msrb.mxu0 %v611_v11 }
  0x71   : > { %594 = vmatpush.msra.mxu3 %v563_v4 }
  0x72   : > { %625 = vmatpush.msrb.mxu0 %v610_v12 }
  0x74   : > { %626 = vmatpush.msrb.mxu0 %v609_v13 }
  0x76   : > { %627 = vmatpush.msrb.mxu0 %v608_v14 }
  0x78   : > { %628 = vmatpush.msrb.mxu0 %v607_v15 }
  0x7a   : > { %629 = vmatpush.msrb.mxu0 %v606_v16 }
  0x7c   : > { %630 = vmatpush.msrb.mxu0 %v605_v17 }
  0x7e   : > { %631 = vmatpush.msrb.mxu0 %v604_v18 }
  0x80   : > { %632 = vmatpush.msrb.mxu0 %v603_v19 }
  0x82   : > { %633 = vmatpush.msrb.mxu0 %v602_v23 }
  0x84   : > { %634 = vmatpush.msrb.mxu0 %v601_v24 }
  0x86   : > { %635 = vmatpush.msrb.mxu0 %v600_v25 }
  0xe3   : > { %v497_v61 = vpop.f32.mrf.mxu0 }
  0xe4   : > { %v498_v62 = vadd.f32 %v497_v61, %v476_v59 }
  0xe6   : > { %v524_v63 = vmul.f32 %v928_v60, %v498_v62 }
  0xe8   : > { %557 = vmatmul.f32.vlgmr.msra.gmra.mxu2 %v524_v63 }
  0xed   : > { %v517_v27 = vpop.f32.mrf.mxu1 }
  0xee   : > { %v518_v28 = vadd.f32 %v517_v27, %v477_v26 }
 0x16b   : > { %v558_v20 = vpop.f32.mrf.mxu2 }
 0x16c   : > { %v561_v21 = vmax.f32 %v558_v20, 0.0 }
 0x16e   : > { %v562_v22 = vmin.f32 %v561_v21, 1.0 }
 0x170   : > { %595 = vmatmul.f32.vlgmr.msra.gmra.mxu3 %v562_v22 }
 0x1f3   : > { %v596_v29 = vpop.f32.mrf.mxu3 }
 0x1f4   : > { %v599_v30 = vmul.f32 %v596_v29, %v518_v28 }
 0x1f6   : > { %636 = vmatmul.f32.vlgmr.msrb.gmra.mxu0 %v599_v30 }
 0x273   : > { %v637_v32 = vpop.f32.mrf.mxu0 }
 0x274   : > { %v638_v33 = vadd.f32 %v929_v31, %v637_v32 }
 0x276   : > { %640 = vst [vmem:[%s440_s18] sm:$0xff] %v638_v33 }
 0x277   : > { %1137 = shalt.err (!%p1134_p13)
}
 0x278   : > { %836 = dma.vmem_to_hbm [thread:$0]  (%p1355_p2), %s656_s25, 128, %s658_s16, %s642_s22  }
 0x279 PF: > { %s669_s15 = sand.u32 1, %s1188_s27   ;;  %p859_p0 = pnand %p802_p6, %p1362_p5 }
 0x27a   : > { %s670_s11 = scalar_lea.sflag [#allocation4], %s669_s15 }
 0x27b   : > { %p860_p4 = pneg %p859_p0 }
 0x27d   : > { %1183 = dma.done.wait (%p860_p4), %s670_s11, 128  }
 0x27e   : > { %1185 = vsyncadd (%p860_p4), %s670_s11, 4294967168  ;;  %s29_s10 = sadd.s32 1, %s1208_s10   ;;  %s1500_s13 = sld [smem:[#allocation20_spill]] }
 0x27f   : > { %p26_p7 = scmp.ge.s32.totalorder %s29_s10, 4   ;;  %s1501_s29 = sld [smem:[#allocation22_spill]] }
 0x280   : > { %s1502_s12 = sld [smem:[#allocation21_spill]]  ;;  %s1503_s27 = smov %s1192_s28 }
 0x281   : > { %s1505_s30 = smov %s1204_s9 }
 0x282   :  { %28 = sbr.rel (!%p26_p7) target bundleno = 15 (0xf), region = 126 }
 0x284   : > { %s1504_s28 = smov %s1500_s13 }
 0x286   : > { %s1506_s9 = smov %s1502_s12 }
 0x287   :  { %676 = vsyncpa [#allocation3], 1 }
 0x288   :  { %678 = vsyncpa [#allocation3 + $0x1], 1 }
 0x289   :  { %679 = vsyncpa [#allocation6], 1 }
 0x28a   :  { %681 = vsyncpa [#allocation6 + $0x1], 1 }
 0x28b   :  { %682 = vsyncpa [#allocation9], 1 }
 0x28c   :  { %683 = vsyncpa [#allocation12], 1 }
 0x28d   :  { %684 = vsyncpa [#allocation4], 1 }
 0x28e   :  { %686 = vsyncpa [#allocation4 + $0x1], 1 }

// kernel: tpu_custom_call.1
= control target key start
LH: loop header
LB: loop body
LE: loop exit
PB: predicated region body
PF: predicated region fallthrough
CT: control target
= control target key end

     0   :  { %s1469_s0 = inlined_call_operand.hbm [shape: f32[2,1,128], index: 0, kind: input, shape index: {}]   ;;  %s1470_s1 = inlined_call_operand.hbm [shape: f32[2,8,128], index: 1, kind: input, shape index: {}]   ;;  %s1471_s2 = inlined_call_operand.hbm [shape: f32[128,256], index: 2, kind: input, shape index: {}]   ;;  %s1472_s3 = inlined_call_operand.vmem [shape: f32[1,256], index: 3, kind: input, shape index: {}]   ;;  %s1473_s4 = inlined_call_operand.hbm [shape: f32[128,128], index: 4, kind: input, shape index: {}]   ;;  %s1474_s5 = inlined_call_operand.vmem [shape: f32[1,128], index: 5, kind: input, shape index: {}]   ;;  %s1475_s6 = inlined_call_operand.hbm [shape: f32[128,128], index: 6, kind: input, shape index: {}]   ;;  %s1476_s7 = inlined_call_operand.hbm [shape: f32[128,128], index: 7, kind: input, shape index: {}]   ;;  %s1477_s8 = inlined_call_operand.hbm [shape: f32[2,8,128], index: 8, kind: output, shape index: {}]  }
   0x1   :  { %1481 = sst [smem:[#allocation24_spill]] %s1471_s2 }
   0x2   :  { %1482 = sst [smem:[#allocation25_spill]] %s1473_s4 }
   0x3   :  { %1483 = sst [smem:[#allocation26_spill]] %s1475_s6 }
   0x4   :  { %1484 = sst [smem:[#allocation27_spill]] %s1476_s7 }
   0x5   :  { %13 = vsyncpa [#allocation3], 0 }
   0x6   :  { %15 = vsyncpa [#allocation3 + $0x1], 0 }
   0x7   :  { %16 = vsyncpa [#allocation6], 0 }
   0x8   :  { %18 = vsyncpa [#allocation6 + $0x1], 0 }
   0x9   :  { %19 = vsyncpa [#allocation9], 0 }
   0xa   :  { %20 = vsyncpa [#allocation12], 0 }
   0xb   :  { %21 = vsyncpa [#allocation4], 0 }
   0xc   :  { %23 = vsyncpa [#allocation4 + $0x1], 0  ;;  %s1263_s27 = smov 0   ;;  %s1265_s28 = smov 0  }
   0xd   :  { %s1267_s29 = smov 0   ;;  %s1269_s30 = smov 0  }
   0xe   :  { %s1271_s9 = smov 0   ;;  %s1273_s10 = smov 0  }
   0xf LB: > { %1485 = sst [smem:[#allocation20_spill]] %s1196_s29  ;;  %s1294_s11 = sadd.s32 4294967295, %s1208_s10   ;;  %s1208_s10 = sphi %s1273_s10, %s29_s10   ;;  %s1204_s9 = sphi %s1271_s9, %s1506_s9   ;;  %s1200_s30 = sphi %s1269_s30, %s1505_s30   ;;  %s1196_s29 = sphi %s1267_s29, %s1501_s29   ;;  %s1192_s28 = sphi %s1265_s28, %s1504_s28   ;;  %s1188_s27 = sphi %s1263_s27, %s1503_s27  }
  0x10   : > { %p797_p0 = scmp.ge.s32.totalorder %s1208_s10, 1  ;;  %p62_p1 = scmp.eq.s32.totalorder %s1294_s11, 0 }
  0x11   : > { %p254_p2 = scmp.lt.s32.totalorder %s1208_s10, 3  ;;  %s1486_s2 = sld [smem:[#allocation24_spill]] }
  0x12   : > { %s1210_s16 = smov [#allocation7]   ;;  %p802_p6 = scmp.ge.s32.totalorder %s1208_s10, 2 }
  0x13   : > { %p1302_p3 = pnand %p797_p0, %p254_p2  ;;  %s267_s17 = sshll.u32 %s1210_s16, 4  ;;  %s268_s17 = int_to_ptr.vmem [resolvable:$true] %s267_s17 }
  0x14   : > { %s1489_s4 = sld [smem:[#allocation25_spill]]  ;;  %s1211_s22 = smov 256  }
  0x15   : > { %p838_p4 = pneg %p1302_p3  ;;  %s1212_s23 = smov 16  }
  0x16   : > { %s1213_s24 = smov [#allocation8]   ;;  %s1214_s26 = smov 128  }
  0x17   : > { %s265_s14 = sshll.u32 %s1486_s2, 4  ;;  %p1310_p5 = pnand %p838_p4, %p62_p1  ;;  %s266_s14 = int_to_ptr.hbm [resolvable:$true] %s265_s14 }
  0x18   : > { %s284_s25 = sshll.u32 %s1213_s24, 4  ;;  %s1215_s12 = smov 8   ;;  %s285_s25 = int_to_ptr.vmem [resolvable:$true] %s284_s25 }
  0x19   : > { %841 = dma.hbm_to_vmem [thread:$0]  (!%p1310_p5), %s266_s14, 4096, %s268_s17, [#allocation6], %s1211_s22, %s1211_s22, %s1212_s23  }
  0x1a   : > { %s282_s21 = sshll.u32 %s1489_s4, 4  ;;  %s1490_s6 = sld [smem:[#allocation26_spill]]  ;;  %s283_s21 = int_to_ptr.hbm [resolvable:$true] %s282_s21 }
  0x1b   : > { %844 = dma.hbm_to_vmem [thread:$0]  (!%p1310_p5), %s283_s21, 2048, %s285_s25, [#allocation9], %s1214_s26, %s1214_s26, %s1215_s12  }
  0x1c   : > { %s1216_s14 = smov [#allocation10]   ;;  %s1491_s7 = sld [smem:[#allocation27_spill]] }
  0x1d   : > { %s301_s17 = sshll.u32 %s1216_s14, 4  ;;  %s1217_s21 = smov [#allocation11]   ;;  %s302_s17 = int_to_ptr.vmem [resolvable:$true] %s301_s17 }
  0x1e   : > { %s315_s24 = sshll.u32 %s1217_s21, 4  ;;  %s796_s25 = sadd.s32 4294967294, %s1208_s10   ;;  %s316_s24 = int_to_ptr.vmem [resolvable:$true] %s315_s24 }
  0x1f   : > { %s41_s13 = sadd.s32 1, %s1204_s9  ;;  %s48_s16 = sadd.s32 1, %s1196_s29 }
  0x20   : > { %s299_s19 = sshll.u32 %s1490_s6, 4  ;;  %p43_p7 = scmp.ge.s32.totalorder %s41_s13, 2  ;;  %s300_s19 = int_to_ptr.hbm [resolvable:$true] %s299_s19 }
  0x21   : > { %847 = dma.hbm_to_vmem [thread:$0]  (!%p1310_p5), %s300_s19, 2048, %s302_s17, [#allocation9], %s1214_s26, %s1214_s26, %s1215_s12  }
  0x22   : > { %s313_s23 = sshll.u32 %s1491_s7, 4  ;;  %p55_p8 = scmp.ne.s32.totalorder %s1196_s29, %s1192_s28  ;;  %s314_s23 = int_to_ptr.hbm [resolvable:$true] %s313_s23 }
  0x23   : > { %850 = dma.hbm_to_vmem [thread:$0]  (!%p1310_p5), %s314_s23, 2048, %s316_s24, [#allocation12], %s1214_s26, %s1214_s26, %s1215_s12  }
  0x24   : > { %p56_p9 = scmp.eq.s32.totalorder %s1208_s10, 0  ;;  %s1508_s13 = smov (%p43_p7, %s41_s13), 0 }
  0x25   : > { %1492 = sst [smem:[#allocation21_spill]] %s1508_s13  ;;  %p61_p11 = scmp.ne.s32.totalorder %s1192_s28, %s1188_s27 }
  0x26   : > { %p1340_p10 = por %p56_p9, %p55_p8  ;;  %s45_s18 = ssub.s32 %s1204_s9, %s1508_s13 }
  0x27   : > { %p241_p12 = scmp.eq.s32.totalorder %s1294_s11, 1  ;;  %p46_p13 = scmp.eq.s32.totalorder %s45_s18, 0 }
  0x28   : > { %p1351_p0 = por %p62_p1, %p61_p11  ;;  %p247_p4 = scmp.eq.s32.totalorder %s796_s25, 1 }
  0x29   : > { %p1355_p2 = por %p241_p12, %p55_p8  ;;  %p866_p7 = scmp.lt.s32.totalorder %s1208_s10, 2 }
  0x2a   : > { %s1360_s14 = scalar_select %p46_p13, %s1196_s29, %s48_s16  }
  0x2b   : > { %p1362_p5 = por %p247_p4, %p61_p11  ;;  %s329_s20 = sand.u32 1, %s1196_s29  }
  0x2c   : > { %1496 = sst [smem:[#allocation22_spill]] %s1360_s14  ;;  %s335_s21 = scalar_lea.hbm %s1469_s0, %s1204_s9 }
  0x2d   : > { %s1497_s17 = scalar_select %p1362_p5, 1, 0 }
  0x2e   : > { %s337_s24 = sshll.u32 %s335_s21, 4  ;;  %s332_s18 = scalar_lea.vmem [#allocation2], %s329_s20  ;;  %s338_s24 = int_to_ptr.hbm [resolvable:$true] %s337_s24 }
  0x2f   : > { %1498 = sst [smem:[#allocation23_spill]] %s1497_s17  ;;  %s339_s2 = sshll.u32 %s332_s18, 4  ;;  %s340_s2 = int_to_ptr.vmem [resolvable:$true] %s339_s2 }
  0x30   : > { %p852_p8 = pnand %p866_p7, %p1340_p10  ;;  %s346_s25 = sand.u32 1, %s1208_s10  }
  0x31   : > { %s803_s16 = sshll.u32 %s329_s20, 3  ;;  %s330_s4 = scalar_lea.sflag [#allocation3], %s329_s20 }
  0x32   : > { %854 = dma.hbm_to_vmem [thread:$0]  (!%p852_p8), %s338_s24, 16, %s340_s2, %s330_s4  }
  0x33   : > { %s804_s6 = sshll.u32 %s1204_s9, 3  ;;  %s350_s7 = scalar_lea.vmem [#allocation5], %s803_s16 }
  0x34   : > { %s359_s13 = sshll.u32 %s350_s7, 4  ;;  %s355_s17 = scalar_lea.hbm %s1470_s1, %s804_s6  ;;  %s360_s13 = int_to_ptr.vmem [resolvable:$true] %s359_s13 }
  0x35   : > { %s357_s22 = sshll.u32 %s355_s17, 4  ;;  %s347_s23 = scalar_lea.sflag [#allocation6], %s346_s25  ;;  %s358_s22 = int_to_ptr.hbm [resolvable:$true] %s357_s22 }
  0x36   : > { %857 = dma.hbm_to_vmem [thread:$0]  (!%p852_p8), %s358_s22, 128, %s360_s13, %s347_s23  }
  0x37   : > { %368 = sbr.rel (%p1302_p3) target bundleno = 633 (0x279), region = 52  ;;  %s1382_s19 = sand.u32 (!%p1302_p3), 1, %s1192_s28  }
  0x38   : > { %s371_s2 = scalar_lea.sflag (!%p1302_p3), [#allocation3], %s1382_s19  ;;  %s373_s4 = scalar_lea.vmem (!%p1302_p3), [#allocation2], %s1382_s19 }
  0x3c   : > { %1163 = dma.done.wait (%p1351_p0), %s371_s2, 16  }
  0x3d   : > { %1165 = vsyncadd (%p1351_p0), %s371_s2, 4294967280  ;;  %s379_s6 = sand.u32 1, %s1294_s11   ;;  %s806_s7 = sshll.u32 %s1382_s19, 3 }
  0x3e   : > { %s380_s29 = scalar_lea.sflag [#allocation6], %s379_s6  ;;  %s1394_s15 = scalar_lea.vmem [#allocation5], %s806_s7 }
  0x3f   : > { %1167 = dma.done.wait (%p1351_p0), %s380_s29, 128  }
  0x40   : > { %1169 = vsyncadd (%p1351_p0), %s380_s29, 4294967168 }
  0x41   : > { %1171 = dma.done.wait (%p62_p1), [#allocation6], 4096  }
  0x42   : > { %1173 = vsyncadd (%p62_p1), [#allocation6], 4294963200 }
  0x43   : > { %1175 = dma.done.wait (%p62_p1), [#allocation9], 4096  }
  0x44   : > { %1177 = vsyncadd (%p62_p1), [#allocation9], 4294963200 }
  0x45   : > { %1179 = dma.done.wait (%p62_p1), [#allocation12], 2048  }
  0x46   : > { %1181 = vsyncadd (%p62_p1), [#allocation12], 4294965248  ;;  %v472_v0 = vld [vmem:[#allocation7 + $0xf0] sm:$0xff]  ;;  %v470_v1 = vld [vmem:[#allocation7 + $0xe0] sm:$0xff]  ;;  %s813_s26 = sshll.u32 %s1200_s30, 3  ;;  %s440_s18 = scalar_lea.vmem [#allocation13], %s806_s7 }
  0x47   : > { %480 = vmatpush.msra.mxu0 %v472_v0  ;;  %v468_v2 = vld [vmem:[#allocation7 + $0xd0] sm:$0xff]  ;;  %v466_v3 = vld [vmem:[#allocation7 + $0xc0] sm:$0xff]  ;;  %v540_v4 = vld [vmem:[#allocation10 + $0x78] sm:$0xff]  ;;  %s653_s20 = scalar_lea.hbm %s1477_s8, %s813_s26  ;;  %s655_s25 = sshll.u32 %s440_s18, 4  ;;  %s656_s25 = int_to_ptr.vmem [resolvable:$true] %s655_s25 }
  0x48   : > { %v464_v5 = vld [vmem:[#allocation7 + $0xb0] sm:$0xff]  ;;  %541 = vmatpush.msra.mxu2 %v540_v4  ;;  %v538_v7 = vld [vmem:[#allocation10 + $0x68] sm:$0xff]  ;;  %v462_v8 = vld [vmem:[#allocation7 + $0xa0] sm:$0xff]  ;;  %s657_s16 = sshll.u32 %s653_s20, 4  ;;  %s642_s22 = scalar_lea.sflag [#allocation4], %s1382_s19  ;;  %s658_s16 = int_to_ptr.hbm [resolvable:$true] %s657_s16 }
  0x49   : > { %481 = vmatpush.msra.mxu0 %v470_v1  ;;  %v539_v6 = vld [vmem:[#allocation10 + $0x70] sm:$0xff]  ;;  %v537_v9 = vld [vmem:[#allocation10 + $0x60] sm:$0xff]  ;;  %v536_v11 = vld [vmem:[#allocation10 + $0x58] sm:$0xff]  ;;  %s1124_s30 = sshra.s32 %s658_s16, 4  ;;  %s1130_s6 = scalar_lea.hbm %s1477_s8, 16  ;;  %s1125_s30 = int_to_ptr.hbm [resolvable:$true] %s1124_s30 }
  0x4a   : > { %542 = vmatpush.msra.mxu2 %v539_v6  ;;  %v460_v10 = vld [vmem:[#allocation7 + $0x90] sm:$0xff]  ;;  %v458_v12 = vld [vmem:[#allocation7 + $0x80] sm:$0xff]  ;;  %v534_v15 = vld [vmem:[#allocation10 + $0x48] sm:$0xff]  ;;  %s1126_s23 = scalar_lea.hbm %s1125_s30, 8  ;;  %p1131_p10 = scmp.lt.s32.totalorder %s1125_s30, %s1477_s8 }
  0x4b   : > { %482 = vmatpush.msra.mxu0 %v468_v2  ;;  %v535_v13 = vld [vmem:[#allocation10 + $0x50] sm:$0xff]  ;;  %v454_v16 = vld [vmem:[#allocation7 + $0x60] sm:$0xff]  ;;  %v532_v19 = vld [vmem:[#allocation10 + $0x38] sm:$0xff]  ;;  %p1127_p1 = scmp.ne.s32.totalorder %s1125_s30, %s1126_s23  ;;  %p1132_p11 = scmp.lt.s32.totalorder %s1130_s6, %s1126_s23 }
  0x4c   : > { %543 = vmatpush.msra.mxu2 %v538_v7  ;;  %v456_v14 = vld [vmem:[#allocation7 + $0x70] sm:$0xff]  ;;  %v533_v17 = vld [vmem:[#allocation10 + $0x40] sm:$0xff]  ;;  %v530_v23 = vld [vmem:[#allocation10 + $0x28] sm:$0xff] }
  0x4d   : > { %483 = vmatpush.msra.mxu0 %v466_v3  ;;  %v452_v18 = vld [vmem:[#allocation7 + $0x50] sm:$0xff]  ;;  %v450_v20 = vld [vmem:[#allocation7 + $0x40] sm:$0xff]  ;;  %v528_v27 = vld [vmem:[#allocation10 + $0x18] sm:$0xff]  ;;  %p1128_p3 = pnand %p1127_p1, %p1355_p2  ;;  %p1133_p12 = por %p1132_p11, %p1131_p10 }
  0x4e   : > { %544 = vmatpush.msra.mxu2 %v537_v9  ;;  %v531_v21 = vld [vmem:[#allocation10 + $0x30] sm:$0xff]  ;;  %v446_v24 = vld [vmem:[#allocation7 + $0x20] sm:$0xff]  ;;  %v526_v31 = vld [vmem:[#allocation10 + $0x8] sm:$0xff] }
  0x4f   : > { %484 = vmatpush.msra.mxu0 %v464_v5  ;;  %v448_v22 = vld [vmem:[#allocation7 + $0x30] sm:$0xff]  ;;  %v529_v25 = vld [vmem:[#allocation10 + $0x20] sm:$0xff]  ;;  %v578_v33 = vld [vmem:[#allocation11 + $0x78] sm:$0xff]  ;;  %p1129_p9 = pneg %p1128_p3 }
  0x50   : > { %545 = vmatpush.msra.mxu2 %v536_v11  ;;  %v444_v26 = vld [vmem:[#allocation7 + $0x10] sm:$0xff]  ;;  %v442_v28 = vld [vmem:[#allocation7] sm:$0xff]  ;;  %v473_v35 = vld [vmem:[#allocation7 + $0xf8] sm:$0xff]  ;;  %579 = vmatpush.msra.mxu3 %v578_v33 }
  0x51   : > { %485 = vmatpush.msra.mxu0 %v462_v8  ;;  %v1413_v29 = vld [vmem:[%s1394_s15] sm:$0xff]  ;;  %v525_v32 = vld [vmem:[#allocation10] sm:$0xff]  ;;  %500 = vmatpush.msra.mxu1 %v473_v35  ;;  %v471_v36 = vld [vmem:[#allocation7 + $0xe8] sm:$0xff]  ;;  %p1134_p13 = pnand %p1133_p12, %p1129_p9 }
  0x52   : > { %546 = vmatpush.msra.mxu2 %v535_v13  ;;  %v527_v30 = vld [vmem:[#allocation10 + $0x10] sm:$0xff]  ;;  %v576_v37 = vld [vmem:[#allocation11 + $0x68] sm:$0xff]  ;;  %v469_v38 = vld [vmem:[#allocation7 + $0xd8] sm:$0xff] }
  0x53   : > { %486 = vmatpush.msra.mxu0 %v460_v10  ;;  %v577_v34 = vld [vmem:[#allocation11 + $0x70] sm:$0xff]  ;;  %501 = vmatpush.msra.mxu1 %v471_v36  ;;  %v575_v39 = vld [vmem:[#allocation11 + $0x60] sm:$0xff]  ;;  %v467_v40 = vld [vmem:[#allocation7 + $0xc8] sm:$0xff] }
  0x54   : > { %547 = vmatpush.msra.mxu2 %v534_v15  ;;  %580 = vmatpush.msra.mxu3 %v577_v34  ;;  %v574_v41 = vld [vmem:[#allocation11 + $0x58] sm:$0xff]  ;;  %v573_v43 = vld [vmem:[#allocation11 + $0x50] sm:$0xff]  ;;  %v463_v44 = vld [vmem:[#allocation7 + $0xa8] sm:$0xff] }
  0x55   : > { %487 = vmatpush.msra.mxu0 %v458_v12  ;;  %502 = vmatpush.msra.mxu1 %v469_v38  ;;  %v465_v42 = vld [vmem:[#allocation7 + $0xb8] sm:$0xff]  ;;  %v572_v45 = vld [vmem:[#allocation11 + $0x48] sm:$0xff]  ;;  %v571_v47 = vld [vmem:[#allocation11 + $0x40] sm:$0xff] }
  0x56   : > { %548 = vmatpush.msra.mxu2 %v533_v17  ;;  %581 = vmatpush.msra.mxu3 %v576_v37  ;;  %v461_v46 = vld [vmem:[#allocation7 + $0x98] sm:$0xff]  ;;  %v459_v48 = vld [vmem:[#allocation7 + $0x88] sm:$0xff]  ;;  %v569_v51 = vld [vmem:[#allocation11 + $0x30] sm:$0xff] }
  0x57   : > { %488 = vmatpush.msra.mxu0 %v456_v14  ;;  %503 = vmatpush.msra.mxu1 %v467_v40  ;;  %v570_v49 = vld [vmem:[#allocation11 + $0x38] sm:$0xff]  ;;  %v455_v52 = vld [vmem:[#allocation7 + $0x68] sm:$0xff]  ;;  %v567_v55 = vld [vmem:[#allocation11 + $0x20] sm:$0xff] }
  0x58   : > { %549 = vmatpush.msra.mxu2 %v532_v19  ;;  %582 = vmatpush.msra.mxu3 %v575_v39  ;;  %v457_v50 = vld [vmem:[#allocation7 + $0x78] sm:$0xff]  ;;  %v568_v53 = vld [vmem:[#allocation11 + $0x28] sm:$0xff]  ;;  %v565_v0 = vld [vmem:[#allocation11 + $0x10] sm:$0xff] }
  0x59   : > { %489 = vmatpush.msra.mxu0 %v454_v16  ;;  %504 = vmatpush.msra.mxu1 %v465_v42  ;;  %v453_v54 = vld [vmem:[#allocation7 + $0x58] sm:$0xff]  ;;  %v451_v56 = vld [vmem:[#allocation7 + $0x48] sm:$0xff]  ;;  %v563_v4 = vld [vmem:[#allocation11] sm:$0xff] }
  0x5a   : > { %550 = vmatpush.msra.mxu2 %v531_v21  ;;  %583 = vmatpush.msra.mxu3 %v574_v41  ;;  %v1419_v57 = vld [vmem:[%s1472_s3] sm:$0x3]  ;;  %v566_v58 = vld [vmem:[#allocation11 + $0x18] sm:$0xff]  ;;  %v614_v8 = vld [vmem:[#allocation8 + $0x70] sm:$0xff] }
  0x5b   : > { %490 = vmatpush.msra.mxu0 %v452_v18  ;;  %505 = vmatpush.msra.mxu1 %v463_v44  ;;  %v476_v59 = vperm.slane %v1419_v57, 0  ;;  %v928_v60 = vld [vmem:[%s373_s4] ss:$0 sm:$0xff]  ;;  %v449_v1 = vld [vmem:[#allocation7 + $0x38] sm:$0xff]  ;;  %v612_v10 = vld [vmem:[#allocation8 + $0x60] sm:$0xff] }
  0x5c   : > { %551 = vmatpush.msra.mxu2 %v530_v23  ;;  %584 = vmatpush.msra.mxu3 %v573_v43  ;;  %v564_v2 = vld [vmem:[#allocation11 + $0x8] sm:$0xff]  ;;  %v445_v5 = vld [vmem:[#allocation7 + $0x18] sm:$0xff]  ;;  %v610_v12 = vld [vmem:[#allocation8 + $0x50] sm:$0xff] }
  0x5d   : > { %491 = vmatpush.msra.mxu0 %v450_v20  ;;  %506 = vmatpush.msra.mxu1 %v461_v46  ;;  %v447_v3 = vld [vmem:[#allocation7 + $0x28] sm:$0xff]  ;;  %v615_v7 = vld [vmem:[#allocation8 + $0x78] sm:$0xff]  ;;  %v608_v14 = vld [vmem:[#allocation8 + $0x40] sm:$0xff] }
  0x5e   : > { %552 = vmatpush.msra.mxu2 %v529_v25  ;;  %585 = vmatpush.msra.mxu3 %v572_v45  ;;  %v443_v6 = vld [vmem:[#allocation7 + $0x8] sm:$0xff]  ;;  %v611_v11 = vld [vmem:[#allocation8 + $0x58] sm:$0xff]  ;;  %v606_v16 = vld [vmem:[#allocation8 + $0x30] sm:$0xff] }
  0x5f   : > { %492 = vmatpush.msra.mxu0 %v448_v22  ;;  %507 = vmatpush.msra.mxu1 %v459_v48  ;;  %v613_v9 = vld [vmem:[#allocation8 + $0x68] sm:$0xff]  ;;  %v607_v15 = vld [vmem:[#allocation8 + $0x38] sm:$0xff]  ;;  %v604_v18 = vld [vmem:[#allocation8 + $0x20] sm:$0xff] }
  0x60   : > { %553 = vmatpush.msra.mxu2 %v528_v27  ;;  %586 = vmatpush.msra.mxu3 %v571_v47  ;;  %v609_v13 = vld [vmem:[#allocation8 + $0x48] sm:$0xff]  ;;  %v603_v19 = vld [vmem:[#allocation8 + $0x18] sm:$0xff]  ;;  %v602_v23 = vld [vmem:[#allocation8 + $0x10] sm:$0xff] }
  0x61   : > { %493 = vmatpush.msra.mxu0 %v446_v24  ;;  %508 = vmatpush.msra.mxu1 %v457_v50  ;;  %v605_v17 = vld [vmem:[#allocation8 + $0x28] sm:$0xff]  ;;  %v600_v25 = vld [vmem:[#allocation8] sm:$0xff] }
  0x62   : > { %554 = vmatpush.msra.mxu2 %v527_v30  ;;  %587 = vmatpush.msra.mxu3 %v570_v49  ;;  %v601_v24 = vld [vmem:[#allocation8 + $0x8] sm:$0xff] }
  0x63   : > { %494 = vmatpush.msra.mxu0 %v444_v26  ;;  %509 = vmatpush.msra.mxu1 %v455_v52  ;;  %v477_v26 = vperm.slane %v1419_v57, 1 }
  0x64   : > { %555 = vmatpush.msra.mxu2 %v526_v31  ;;  %588 = vmatpush.msra.mxu3 %v569_v51  ;;  %v929_v31 = vld [vmem:[%s1474_s5] ss:$0 sm:$0xff] }
  0x65   : > { %495 = vmatpush.msra.mxu0 %v442_v28  ;;  %510 = vmatpush.msra.mxu1 %v453_v54 }
  0x66   : > { %496 = vmatmul.f32.vlgmr.msra.gmra.mxu0 %v1413_v29  ;;  %556 = vmatpush.msra.mxu2 %v525_v32 }
  0x67   : > { %589 = vmatpush.msra.mxu3 %v568_v53  ;;  %511 = vmatpush.msra.mxu1 %v451_v56 }
  0x68   : > { %620 = vmatpush.msrb.mxu0 %v615_v7 }
  0x69   : > { %590 = vmatpush.msra.mxu3 %v567_v55  ;;  %512 = vmatpush.msra.mxu1 %v449_v1 }
  0x6a   : > { %621 = vmatpush.msrb.mxu0 %v614_v8 }
  0x6b   : > { %591 = vmatpush.msra.mxu3 %v566_v58  ;;  %513 = vmatpush.msra.mxu1 %v447_v3 }
  0x6c   : > { %622 = vmatpush.msrb.mxu0 %v613_v9 }
  0x6d   : > { %592 = vmatpush.msra.mxu3 %v565_v0  ;;  %514 = vmatpush.msra.mxu1 %v445_v5 }
  0x6e   : > { %623 = vmatpush.msrb.mxu0 %v612_v10 }
  0x6f   : > { %593 = vmatpush.msra.mxu3 %v564_v2  ;;  %515 = vmatpush.msra.mxu1 %v443_v6 }
  0x70   : > { %516 = vmatmul.f32.vlgmr.msra.gmra.mxu1 %v1413_v29  ;;  %624 = vmatpush.msrb.mxu0 %v611_v11 }
  0x71   : > { %594 = vmatpush.msra.mxu3 %v563_v4 }
  0x72   : > { %625 = vmatpush.msrb.mxu0 %v610_v12 }
  0x74   : > { %626 = vmatpush.msrb.mxu0 %v609_v13 }
  0x76   : > { %627 = vmatpush.msrb.mxu0 %v608_v14 }
  0x78   : > { %628 = vmatpush.msrb.mxu0 %v607_v15 }
  0x7a   : > { %629 = vmatpush.msrb.mxu0 %v606_v16 }
  0x7c   : > { %630 = vmatpush.msrb.mxu0 %v605_v17 }
  0x7e   : > { %631 = vmatpush.msrb.mxu0 %v604_v18 }
  0x80   : > { %632 = vmatpush.msrb.mxu0 %v603_v19 }
  0x82   : > { %633 = vmatpush.msrb.mxu0 %v602_v23 }
  0x84   : > { %634 = vmatpush.msrb.mxu0 %v601_v24 }
  0x86   : > { %635 = vmatpush.msrb.mxu0 %v600_v25 }
  0xe3   : > { %v497_v61 = vpop.f32.mrf.mxu0 }
  0xe4   : > { %v498_v62 = vadd.f32 %v497_v61, %v476_v59 }
  0xe6   : > { %v524_v63 = vmul.f32 %v928_v60, %v498_v62 }
  0xe8   : > { %557 = vmatmul.f32.vlgmr.msra.gmra.mxu2 %v524_v63 }
  0xed   : > { %v517_v27 = vpop.f32.mrf.mxu1 }
  0xee   : > { %v518_v28 = vadd.f32 %v517_v27, %v477_v26 }
 0x16b   : > { %v558_v20 = vpop.f32.mrf.mxu2 }
 0x16c   : > { %v561_v21 = vmax.f32 %v558_v20, 0.0 }
 0x16e   : > { %v562_v22 = vmin.f32 %v561_v21, 1.0 }
 0x170   : > { %595 = vmatmul.f32.vlgmr.msra.gmra.mxu3 %v562_v22 }
 0x1f3   : > { %v596_v29 = vpop.f32.mrf.mxu3 }
 0x1f4   : > { %v599_v30 = vmul.f32 %v596_v29, %v518_v28 }
 0x1f6   : > { %636 = vmatmul.f32.vlgmr.msrb.gmra.mxu0 %v599_v30 }
 0x273   : > { %v637_v32 = vpop.f32.mrf.mxu0 }
 0x274   : > { %v638_v33 = vadd.f32 %v929_v31, %v637_v32 }
 0x276   : > { %640 = vst [vmem:[%s440_s18] sm:$0xff] %v638_v33 }
 0x277   : > { %1137 = shalt.err (!%p1134_p13)
}
 0x278   : > { %836 = dma.vmem_to_hbm [thread:$0]  (%p1355_p2), %s656_s25, 128, %s658_s16, %s642_s22  }
 0x279 PF: > { %s669_s15 = sand.u32 1, %s1188_s27   ;;  %p859_p0 = pnand %p802_p6, %p1362_p5 }
 0x27a   : > { %s670_s11 = scalar_lea.sflag [#allocation4], %s669_s15 }
 0x27b   : > { %p860_p4 = pneg %p859_p0 }
 0x27d   : > { %1183 = dma.done.wait (%p860_p4), %s670_s11, 128  }
 0x27e   : > { %1185 = vsyncadd (%p860_p4), %s670_s11, 4294967168  ;;  %s29_s10 = sadd.s32 1, %s1208_s10   ;;  %s1500_s13 = sld [smem:[#allocation20_spill]] }
 0x27f   : > { %p26_p7 = scmp.ge.s32.totalorder %s29_s10, 4   ;;  %s1501_s29 = sld [smem:[#allocation22_spill]] }
 0x280   : > { %s1502_s12 = sld [smem:[#allocation21_spill]]  ;;  %s1503_s27 = smov %s1192_s28 }
 0x281   : > { %s1505_s30 = smov %s1204_s9 }
 0x282   :  { %28 = sbr.rel (!%p26_p7) target bundleno = 15 (0xf), region = 126 }
 0x284   : > { %s1504_s28 = smov %s1500_s13 }
 0x286   : > { %s1506_s9 = smov %s1502_s12 }
 0x287   :  { %676 = vsyncpa [#allocation3], 1 }
 0x288   :  { %678 = vsyncpa [#allocation3 + $0x1], 1 }
 0x289   :  { %679 = vsyncpa [#allocation6], 1 }
 0x28a   :  { %681 = vsyncpa [#allocation6 + $0x1], 1 }
 0x28b   :  { %682 = vsyncpa [#allocation9], 1 }
 0x28c   :  { %683 = vsyncpa [#allocation12], 1 }
 0x28d   :  { %684 = vsyncpa [#allocation4], 1 }
 0x28e   :  { %686 = vsyncpa [#allocation4 + $0x1], 1 }

</bundles_post_ra>
